<compile_context>
chip_gen: v7x
topology: tpu7x:2x2x1
jax: 0.10.0
libtpu: 0.0.40
codegen_flags: <defaults>
</compile_context>

<pallas_src>
import functools
import math

import jax
import jax.numpy as jnp
from jax.experimental import pallas as pl
from jax.experimental.pallas import tpu as pltpu


def ae_kernel(x_ref,
              w1_ref, b1_ref, w2_ref, b2_ref, w3_ref, b3_ref,    # encoder
              w34_ref, b34_ref, w5_ref, b5_ref, w6_ref, b6_ref,  # decoder (w4 folded into w34)
              y_ref, z_ref):
    """Fused AE forward for one batch tile (independent rows).

    Matmul inputs are bf16 (MXU-native on all generations); accumulation, bias
    add and activations run in f32. Biases are (1, N) rows broadcast implicitly
    in the add.
    """
    bf16 = jnp.bfloat16
    # x arrives as f32 straight from HBM; the bf16 pack happens here on the VPU
    # (hidden under the MXU) instead of a separate wrapper-side XLA pass.
    x = x_ref[...].astype(bf16)

    # ---- encoder ----
    h = jnp.dot(x, w1_ref[...], preferred_element_type=jnp.float32) + b1_ref[...]
    h = jnp.maximum(h, 0.0).astype(bf16)
    h = jnp.dot(h, w2_ref[...], preferred_element_type=jnp.float32) + b2_ref[...]
    h = jnp.maximum(h, 0.0).astype(bf16)

    # z side output: the narrow (K=nh, N=nz) matmul no longer gates the decoder.
    z = jnp.dot(h, w3_ref[...], preferred_element_type=jnp.float32) + b3_ref[...]
    z_ref[...] = z.astype(z_ref.dtype)
    # TODO(synk): z block last dim = nz (8) -> masked vst.msk / narrow DMA;
    # lane-pad the z output only if profiling shows it mattering or nz grows.

    # ---- decoder ----
    # W34 = w3 @ w4, b34 = b3 @ w4 + b4 are precomputed in the wrapper, so the
    # decoder entry is a full nh-wide matmul instead of the serialized
    # MXU-starved (K=nh,N=nz) -> (K=nz,N=nh) pair.
    d = jnp.dot(h, w34_ref[...], preferred_element_type=jnp.float32) + b34_ref[...]
    d = jnp.maximum(d, 0.0).astype(bf16)
    d = jnp.dot(d, w5_ref[...], preferred_element_type=jnp.float32) + b5_ref[...]
    d = jnp.maximum(d, 0.0).astype(bf16)
    y = jnp.dot(d, w6_ref[...], preferred_element_type=jnp.float32) + b6_ref[...]

    # Sigmoid epilogue: exp on bf16 (EUP bf16 path on v6e/v7x; v5e upcasts) and
    # approx reciprocal on the EUP slot; compose/store in f32.
    e = jnp.exp((-y).astype(bf16)).astype(jnp.float32)
    y_ref[...] = pl.reciprocal(1.0 + e, approx=True).astype(y_ref.dtype)


def _const_spec(shape):
    """Whole array resident in VMEM every grid step (weights / biases).

    Single-buffered: the block index is constant across the grid, so the
    default double buffering would only duplicate the weights in VMEM.
    """
    return pl.BlockSpec(shape, lambda i: (0,) * len(shape),
                        pipeline_mode=pl.Buffered(1))


def _round_up(x: int, m: int) -> int:
    return ((x + m - 1) // m) * m


@functools.partial(jax.jit, static_argnames=("imgsize", "batch_tile"))
def ae_forward(x_nchw, params, *, imgsize, batch_tile=128):
    """x_nchw: (B, 1, imgsize, imgsize) float32. Returns (y, z) like the torch module."""
    B = x_nchw.shape[0]
    nin = imgsize * imgsize
    bf16 = jnp.bfloat16

    w1, b1, w2, b2, w3, b3, w4, b4, w5, b5, w6, b6 = params
    nz = w3.shape[1]

    # Fold the nz-narrow decoder entry into one wide layer (exact in real
    # arithmetic): relu((h@w3 + b3) @ w4 + b4) == relu(h @ (w3@w4) + (b3@w4 + b4)).
    w34 = w3 @ w4                  # (nh, nh), f32 product
    b34 = b3 @ w4 + b4             # (1, nh),  f32

    # bf16 matmul operands (MXU native); biases / accumulation / outputs stay f32.
    w1, w2, w3, w34, w5, w6 = (w.astype(bf16) for w in (w1, w2, w3, w34, w5, w6))

    # x stays f32 end-to-end in the wrapper: the flatten is a free reshape, the
    # bf16 cast happens inside the kernel, and no pad array is materialized
    # (ragged last block handled by Pallas; rows are independent, so garbage in
    # the out-of-range rows never contaminates valid rows and is masked on store).
    x_flat = x_nchw.reshape(B, nin)            # nn.Flatten()

    # ---- batch tile selection ----
    # 128 rows is the sweet spot across generations: M=128 matches v5e's
    # 128-wide MXU (rows simply stream through the 256-wide MXU on v6e/v7x),
    # halves f32-intermediate register/VMEM pressure vs 256 rows, and yields
    # >= 2 grid steps per v7x TensorCore for realistic batches so the x-tile
    # DMA of step i+1 overlaps compute of step i. Row granularity is 16
    # (bf16 sublane packing).
    tb = max(16, _round_up(int(batch_tile), 16))
    while tb > 128 and pl.cdiv(B, tb) < 4:     # keep >= 2 steps per v7x core
        tb //= 2
    tb = _round_up(tb, 16)
    if B < tb:
        tb = _round_up(B, 16)                  # avoid a mostly-empty tile for tiny batches
    grid = (pl.cdiv(B, tb),)

    in_specs = [
        pl.BlockSpec((tb, nin), lambda i: (i, 0)),        # x tile (f32, cast in-kernel)
        _const_spec(w1.shape), _const_spec(b1.shape),
        _const_spec(w2.shape), _const_spec(b2.shape),
        _const_spec(w3.shape), _const_spec(b3.shape),
        _const_spec(w34.shape), _const_spec(b34.shape),
        _const_spec(w5.shape), _const_spec(b5.shape),
        _const_spec(w6.shape), _const_spec(b6.shape),
    ]
    out_specs = [
        pl.BlockSpec((tb, nin), lambda i: (i, 0)),        # y (flat, f32, lane-dense)
        pl.BlockSpec((tb, nz), lambda i: (i, 0)),         # z (f32; nz is the full dim)
    ]
    out_shape = [
        jax.ShapeDtypeStruct((B, nin), jnp.float32),
        jax.ShapeDtypeStruct((B, nz), jnp.float32),
    ]

    y_flat, z = pl.pallas_call(
        ae_kernel,
        grid=grid,
        in_specs=in_specs,
        out_specs=out_specs,
        out_shape=out_shape,
        compiler_params=pltpu.CompilerParams(
            dimension_semantics=("parallel",)),
        # NOTE: at these layer sizes everything fits the default scoped-VMEM
        # limit (16 MiB v5e, 32 MiB v6e/v7x). If nh/nin are scaled up, set
        # vmem_limit_bytes= explicitly and budget the all-weights-resident
        # design against v7x's 64 MiB physical VMEM (half of v5e/v6e's 128 MiB,
        # with double-buffer headroom for the x/y tiles); around nh ~ 2-3K the
        # resident-weight scheme stops fitting and the wide layers need a
        # K-axis grid split.
    )(x_flat, w1, b1, w2, b2, w3, b3, w34, b34, w5, b5, w6, b6)

    y = y_flat.reshape(B, 1, imgsize, imgsize)            # nn.Unflatten(1, (1, H, W))
    return y, z


def init_params(key, nin, nh, nz):
    """Deterministic init mimicking nn.Linear defaults (U(-1/sqrt(fan_in), +1/sqrt(fan_in))).
    Weights stored as (in_features, out_features); biases as (1, out_features). All f32."""
    dims = [(nin, nh), (nh, nh), (nh, nz),    # encoder
            (nz, nh), (nh, nh), (nh, nin)]    # decoder
    params = []
    for (fan_in, fan_out) in dims:
        key, kw, kb = jax.random.split(key, 3)
        bound = 1.0 / math.sqrt(fan_in)
        w = jax.random.uniform(kw, (fan_in, fan_out), jnp.float32, -bound, bound)
        b = jax.random.uniform(kb, (1, fan_out), jnp.float32, -bound, bound)
        params += [w, b]
    return tuple(params)


def ae_forward_ref(x_nchw, params, imgsize):
    """Pure-f32 JAX reference (exact PyTorch semantics)."""
    B = x_nchw.shape[0]
    x = x_nchw.reshape(B, imgsize * imgsize)
    w1, b1, w2, b2, w3, b3, w4, b4, w5, b5, w6, b6 = params
    h = jnp.maximum(x @ w1 + b1, 0.0)
    h = jnp.maximum(h @ w2 + b2, 0.0)
    z = h @ w3 + b3
    d = jnp.maximum(z @ w4 + b4, 0.0)
    d = jnp.maximum(d @ w5 + b5, 0.0)
    y = jax.nn.sigmoid(d @ w6 + b6)
    return y.reshape(B, 1, imgsize, imgsize), z


def ae_forward_mixed_ref(x_nchw, params, imgsize):
    """Pure-JAX reference mirroring the kernel's numerics:
    bf16 matmul operands / f32 accumulation, fused W34 = w3@w4 decoder entry,
    and a bf16-exp sigmoid (exact reciprocal instead of the EUP approximation)."""
    B = x_nchw.shape[0]
    bf = jnp.bfloat16
    x = x_nchw.reshape(B, imgsize * imgsize).astype(bf)
    w1, b1, w2, b2, w3, b3, w4, b4, w5, b5, w6, b6 = params
    w34 = w3 @ w4
    b34 = b3 @ w4 + b4

    def mm(a, w):
        return jnp.dot(a, w.astype(bf), preferred_element_type=jnp.float32)

    h = jnp.maximum(mm(x, w1) + b1, 0.0).astype(bf)
    h = jnp.maximum(mm(h, w2) + b2, 0.0).astype(bf)
    z = mm(h, w3) + b3
    d = jnp.maximum(mm(h, w34) + b34, 0.0).astype(bf)
    d = jnp.maximum(mm(d, w5) + b5, 0.0).astype(bf)
    yl = mm(d, w6) + b6
    e = jnp.exp((-yl).astype(bf)).astype(jnp.float32)
    y = 1.0 / (1.0 + e)
    return y.reshape(B, 1, imgsize, imgsize), z


if __name__ == "__main__":
    # Small shapes consistent with the module (nz, nh, imgsize are constructor
    # args). B=500 with the default 128-row tile gives a 4-step grid (2 steps
    # per v7x TensorCore) and exercises the ragged last block (116 valid rows).
    B, imgsize, nh, nz = 500, 16, 256, 8
    nin = imgsize * imgsize

    key = jax.random.PRNGKey(0)
    key_x, key_p = jax.random.split(key)
    x = jax.random.uniform(key_x, (B, 1, imgsize, imgsize), jnp.float32)  # NCHW input
    params = init_params(key_p, nin, nh, nz)

    y, z = ae_forward(x, params, imgsize=imgsize)        # default batch_tile=128
    jax.block_until_ready((y, z))

    assert y.shape == (B, 1, imgsize, imgsize) and z.shape == (B, nz)

    # Check vs a reference with matching bf16-matmul / f32-accumulate / fused-W34
    # numerics (kernel additionally uses the EUP approx reciprocal in the sigmoid).
    y_mx, z_mx = ae_forward_mixed_ref(x, params, imgsize)
    assert jnp.allclose(y, y_mx, atol=1e-2, rtol=1e-2)
    assert jnp.allclose(z, z_mx, atol=1e-2, rtol=1e-2)

    # Loose check vs the pure-f32 (PyTorch-equivalent) reference: bf16 matmul
    # operands with f32 accumulation agree to roughly 1e-2.
    y_f32, z_f32 = ae_forward_ref(x, params, imgsize)
    assert jnp.allclose(y, y_f32, atol=3e-2, rtol=3e-2)
    assert jnp.allclose(z, z_f32, atol=3e-2, rtol=3e-2)

    print("KERNEL_OK")
</pallas_src>

<mosaic_0001>
module attributes {stable_mosaic.version = 11 : i64} {
  func.func @ae_kernel(%arg0: i32, %arg1: memref<128x256xf32, #tpu.memory_space<vmem>>, %arg2: memref<256x256xbf16, #tpu.memory_space<vmem>>, %arg3: memref<1x256xf32, #tpu.memory_space<vmem>>, %arg4: memref<256x256xbf16, #tpu.memory_space<vmem>>, %arg5: memref<1x256xf32, #tpu.memory_space<vmem>>, %arg6: memref<256x8xbf16, #tpu.memory_space<vmem>>, %arg7: memref<1x8xf32, #tpu.memory_space<vmem>>, %arg8: memref<256x256xbf16, #tpu.memory_space<vmem>>, %arg9: memref<1x256xf32, #tpu.memory_space<vmem>>, %arg10: memref<256x256xbf16, #tpu.memory_space<vmem>>, %arg11: memref<1x256xf32, #tpu.memory_space<vmem>>, %arg12: memref<256x256xbf16, #tpu.memory_space<vmem>>, %arg13: memref<1x256xf32, #tpu.memory_space<vmem>>, %arg14: memref<128x256xf32, #tpu.memory_space<vmem>>, %arg15: memref<128x8xf32, #tpu.memory_space<vmem>>) attributes {dimension_semantics = [#tpu.dimension_semantics<parallel>], iteration_bounds = array<i64: 4>, scalar_prefetch = 0 : i64, scratch_operands = 0 : i64, tpu.core_type = #tpu.core_type<tc>, window_params = [{transform_indices = @transform_0, window_bounds = array<i64: 128, 256>}, {pipeline_mode = #tpu.pipeline_mode<synchronous>, transform_indices = @transform_1, window_bounds = array<i64: 256, 256>}, {pipeline_mode = #tpu.pipeline_mode<synchronous>, transform_indices = @transform_2, window_bounds = array<i64: 1, 256>}, {pipeline_mode = #tpu.pipeline_mode<synchronous>, transform_indices = @transform_3, window_bounds = array<i64: 256, 256>}, {pipeline_mode = #tpu.pipeline_mode<synchronous>, transform_indices = @transform_4, window_bounds = array<i64: 1, 256>}, {pipeline_mode = #tpu.pipeline_mode<synchronous>, transform_indices = @transform_5, window_bounds = array<i64: 256, 8>}, {pipeline_mode = #tpu.pipeline_mode<synchronous>, transform_indices = @transform_6, window_bounds = array<i64: 1, 8>}, {pipeline_mode = #tpu.pipeline_mode<synchronous>, transform_indices = @transform_7, window_bounds = array<i64: 256, 256>}, {pipeline_mode = #tpu.pipeline_mode<synchronous>, transform_indices = @transform_8, window_bounds = array<i64: 1, 256>}, {pipeline_mode = #tpu.pipeline_mode<synchronous>, transform_indices = @transform_9, window_bounds = array<i64: 256, 256>}, {pipeline_mode = #tpu.pipeline_mode<synchronous>, transform_indices = @transform_10, window_bounds = array<i64: 1, 256>}, {pipeline_mode = #tpu.pipeline_mode<synchronous>, transform_indices = @transform_11, window_bounds = array<i64: 256, 256>}, {pipeline_mode = #tpu.pipeline_mode<synchronous>, transform_indices = @transform_12, window_bounds = array<i64: 1, 256>}, {transform_indices = @transform_13, window_bounds = array<i64: 128, 256>}, {transform_indices = @transform_14, window_bounds = array<i64: 128, 8>}]} {
    %c0 = arith.constant 0 : index
    %c0_0 = arith.constant 0 : index
    %0 = vector.load %arg1[%c0, %c0_0] : memref<128x256xf32, #tpu.memory_space<vmem>>, vector<128x256xf32>
    %1 = arith.truncf %0 : vector<128x256xf32> to vector<128x256xbf16>
    %c0_1 = arith.constant 0 : index
    %c0_2 = arith.constant 0 : index
    %2 = vector.load %arg2[%c0_1, %c0_2] : memref<256x256xbf16, #tpu.memory_space<vmem>>, vector<256x256xbf16>
    %cst = arith.constant dense<0.000000e+00> : vector<128x256xf32>
    %3 = tpu.matmul %1, %2, %cst {dimension_numbers = #tpu.dot_dimension_numbers<[1], [0], [0], [1], [0, 0, 1, 1], [], []>} : vector<128x256xbf16>, vector<256x256xbf16>, vector<128x256xf32> -> vector<128x256xf32>
    %c0_3 = arith.constant 0 : index
    %c0_4 = arith.constant 0 : index
    %4 = vector.load %arg3[%c0_3, %c0_4] : memref<1x256xf32, #tpu.memory_space<vmem>>, vector<1x256xf32>
    %5 = vector.broadcast %4 : vector<1x256xf32> to vector<128x256xf32>
    %6 = arith.addf %3, %5 : vector<128x256xf32>
    %cst_5 = arith.constant 0.000000e+00 : f32
    %7 = vector.broadcast %cst_5 : f32 to vector<128x256xf32>
    %8 = arith.maximumf %6, %7 : vector<128x256xf32>
    %9 = arith.truncf %8 : vector<128x256xf32> to vector<128x256xbf16>
    %c0_6 = arith.constant 0 : index
    %c0_7 = arith.constant 0 : index
    %10 = vector.load %arg4[%c0_6, %c0_7] : memref<256x256xbf16, #tpu.memory_space<vmem>>, vector<256x256xbf16>
    %cst_8 = arith.constant dense<0.000000e+00> : vector<128x256xf32>
    %11 = tpu.matmul %9, %10, %cst_8 {dimension_numbers = #tpu.dot_dimension_numbers<[1], [0], [0], [1], [0, 0, 1, 1], [], []>} : vector<128x256xbf16>, vector<256x256xbf16>, vector<128x256xf32> -> vector<128x256xf32>
    %c0_9 = arith.constant 0 : index
    %c0_10 = arith.constant 0 : index
    %12 = vector.load %arg5[%c0_9, %c0_10] : memref<1x256xf32, #tpu.memory_space<vmem>>, vector<1x256xf32>
    %13 = vector.broadcast %12 : vector<1x256xf32> to vector<128x256xf32>
    %14 = arith.addf %11, %13 : vector<128x256xf32>
    %cst_11 = arith.constant 0.000000e+00 : f32
    %15 = vector.broadcast %cst_11 : f32 to vector<128x256xf32>
    %16 = arith.maximumf %14, %15 : vector<128x256xf32>
    %17 = arith.truncf %16 : vector<128x256xf32> to vector<128x256xbf16>
    %c0_12 = arith.constant 0 : index
    %c0_13 = arith.constant 0 : index
    %18 = vector.load %arg6[%c0_12, %c0_13] : memref<256x8xbf16, #tpu.memory_space<vmem>>, vector<256x8xbf16>
    %cst_14 = arith.constant dense<0.000000e+00> : vector<128x8xf32>
    %19 = tpu.matmul %17, %18, %cst_14 {dimension_numbers = #tpu.dot_dimension_numbers<[1], [0], [0], [1], [0, 0, 1, 1], [], []>} : vector<128x256xbf16>, vector<256x8xbf16>, vector<128x8xf32> -> vector<128x8xf32>
    %c0_15 = arith.constant 0 : index
    %c0_16 = arith.constant 0 : index
    %20 = vector.load %arg7[%c0_15, %c0_16] : memref<1x8xf32, #tpu.memory_space<vmem>>, vector<1x8xf32>
    %21 = vector.broadcast %20 : vector<1x8xf32> to vector<128x8xf32>
    %22 = arith.addf %19, %21 : vector<128x8xf32>
    %c0_17 = arith.constant 0 : index
    %c0_18 = arith.constant 0 : index
    %23 = vector.load %arg15[%c0_17, %c0_18] : memref<128x8xf32, #tpu.memory_space<vmem>>, vector<128x8xf32>
    tpu.vector_store %arg15[%c0_17, %c0_18], %22 {strides = array<i32>} : memref<128x8xf32, #tpu.memory_space<vmem>>, vector<128x8xf32>,
    %c0_19 = arith.constant 0 : index
    %c0_20 = arith.constant 0 : index
    %24 = vector.load %arg8[%c0_19, %c0_20] : memref<256x256xbf16, #tpu.memory_space<vmem>>, vector<256x256xbf16>
    %cst_21 = arith.constant dense<0.000000e+00> : vector<128x256xf32>
    %25 = tpu.matmul %17, %24, %cst_21 {dimension_numbers = #tpu.dot_dimension_numbers<[1], [0], [0], [1], [0, 0, 1, 1], [], []>} : vector<128x256xbf16>, vector<256x256xbf16>, vector<128x256xf32> -> vector<128x256xf32>
    %c0_22 = arith.constant 0 : index
    %c0_23 = arith.constant 0 : index
    %26 = vector.load %arg9[%c0_22, %c0_23] : memref<1x256xf32, #tpu.memory_space<vmem>>, vector<1x256xf32>
    %27 = vector.broadcast %26 : vector<1x256xf32> to vector<128x256xf32>
    %28 = arith.addf %25, %27 : vector<128x256xf32>
    %cst_24 = arith.constant 0.000000e+00 : f32
    %29 = vector.broadcast %cst_24 : f32 to vector<128x256xf32>
    %30 = arith.maximumf %28, %29 : vector<128x256xf32>
    %31 = arith.truncf %30 : vector<128x256xf32> to vector<128x256xbf16>
    %c0_25 = arith.constant 0 : index
    %c0_26 = arith.constant 0 : index
    %32 = vector.load %arg10[%c0_25, %c0_26] : memref<256x256xbf16, #tpu.memory_space<vmem>>, vector<256x256xbf16>
    %cst_27 = arith.constant dense<0.000000e+00> : vector<128x256xf32>
    %33 = tpu.matmul %31, %32, %cst_27 {dimension_numbers = #tpu.dot_dimension_numbers<[1], [0], [0], [1], [0, 0, 1, 1], [], []>} : vector<128x256xbf16>, vector<256x256xbf16>, vector<128x256xf32> -> vector<128x256xf32>
    %c0_28 = arith.constant 0 : index
    %c0_29 = arith.constant 0 : index
    %34 = vector.load %arg11[%c0_28, %c0_29] : memref<1x256xf32, #tpu.memory_space<vmem>>, vector<1x256xf32>
    %35 = vector.broadcast %34 : vector<1x256xf32> to vector<128x256xf32>
    %36 = arith.addf %33, %35 : vector<128x256xf32>
    %cst_30 = arith.constant 0.000000e+00 : f32
    %37 = vector.broadcast %cst_30 : f32 to vector<128x256xf32>
    %38 = arith.maximumf %36, %37 : vector<128x256xf32>
    %39 = arith.truncf %38 : vector<128x256xf32> to vector<128x256xbf16>
    %c0_31 = arith.constant 0 : index
    %c0_32 = arith.constant 0 : index
    %40 = vector.load %arg12[%c0_31, %c0_32] : memref<256x256xbf16, #tpu.memory_space<vmem>>, vector<256x256xbf16>
    %cst_33 = arith.constant dense<0.000000e+00> : vector<128x256xf32>
    %41 = tpu.matmul %39, %40, %cst_33 {dimension_numbers = #tpu.dot_dimension_numbers<[1], [0], [0], [1], [0, 0, 1, 1], [], []>} : vector<128x256xbf16>, vector<256x256xbf16>, vector<128x256xf32> -> vector<128x256xf32>
    %c0_34 = arith.constant 0 : index
    %c0_35 = arith.constant 0 : index
    %42 = vector.load %arg13[%c0_34, %c0_35] : memref<1x256xf32, #tpu.memory_space<vmem>>, vector<1x256xf32>
    %43 = vector.broadcast %42 : vector<1x256xf32> to vector<128x256xf32>
    %44 = arith.addf %41, %43 : vector<128x256xf32>
    %cst_36 = arith.constant 0.000000e+00 : f32
    %45 = vector.broadcast %cst_36 : f32 to vector<128x256xf32>
    %46 = arith.subf %45, %44 : vector<128x256xf32>
    %47 = arith.truncf %46 : vector<128x256xf32> to vector<128x256xbf16>
    %48 = math.exp %47 : vector<128x256xbf16>
    %49 = arith.extf %48 : vector<128x256xbf16> to vector<128x256xf32>
    %cst_37 = arith.constant 1.000000e+00 : f32
    %50 = vector.broadcast %cst_37 : f32 to vector<128x256xf32>
    %51 = arith.addf %50, %49 : vector<128x256xf32>
    %52 = tpu.reciprocal %51 {approx = true} : vector<128x256xf32> -> vector<128x256xf32>
    %c0_38 = arith.constant 0 : index
    %c0_39 = arith.constant 0 : index
    %53 = vector.load %arg14[%c0_38, %c0_39] : memref<128x256xf32, #tpu.memory_space<vmem>>, vector<128x256xf32>
    tpu.vector_store %arg14[%c0_38, %c0_39], %52 {strides = array<i32>} : memref<128x256xf32, #tpu.memory_space<vmem>>, vector<128x256xf32>,
    return
  }
  func.func @transform_0(%arg0: i32) -> (i32, i32) {
    %c0_i32 = arith.constant 0 : i32
    %c0_i32_0 = arith.constant 0 : i32
    return %arg0, %c0_i32 : i32, i32
  }
  func.func @transform_1(%arg0: i32) -> (i32, i32) {
    %c0_i32 = arith.constant 0 : i32
    %c0_i32_0 = arith.constant 0 : i32
    %c0_i32_1 = arith.constant 0 : i32
    return %c0_i32, %c0_i32_0 : i32, i32
  }
  func.func @transform_2(%arg0: i32) -> (i32, i32) {
    %c0_i32 = arith.constant 0 : i32
    %c0_i32_0 = arith.constant 0 : i32
    %c0_i32_1 = arith.constant 0 : i32
    return %c0_i32, %c0_i32_0 : i32, i32
  }
  func.func @transform_3(%arg0: i32) -> (i32, i32) {
    %c0_i32 = arith.constant 0 : i32
    %c0_i32_0 = arith.constant 0 : i32
    %c0_i32_1 = arith.constant 0 : i32
    return %c0_i32, %c0_i32_0 : i32, i32
  }
  func.func @transform_4(%arg0: i32) -> (i32, i32) {
    %c0_i32 = arith.constant 0 : i32
    %c0_i32_0 = arith.constant 0 : i32
    %c0_i32_1 = arith.constant 0 : i32
    return %c0_i32, %c0_i32_0 : i32, i32
  }
  func.func @transform_5(%arg0: i32) -> (i32, i32) {
    %c0_i32 = arith.constant 0 : i32
    %c0_i32_0 = arith.constant 0 : i32
    %c0_i32_1 = arith.constant 0 : i32
    return %c0_i32, %c0_i32_0 : i32, i32
  }
  func.func @transform_6(%arg0: i32) -> (i32, i32) {
    %c0_i32 = arith.constant 0 : i32
    %c0_i32_0 = arith.constant 0 : i32
    %c0_i32_1 = arith.constant 0 : i32
    return %c0_i32, %c0_i32_0 : i32, i32
  }
  func.func @transform_7(%arg0: i32) -> (i32, i32) {
    %c0_i32 = arith.constant 0 : i32
    %c0_i32_0 = arith.constant 0 : i32
    %c0_i32_1 = arith.constant 0 : i32
    return %c0_i32, %c0_i32_0 : i32, i32
  }
  func.func @transform_8(%arg0: i32) -> (i32, i32) {
    %c0_i32 = arith.constant 0 : i32
    %c0_i32_0 = arith.constant 0 : i32
    %c0_i32_1 = arith.constant 0 : i32
    return %c0_i32, %c0_i32_0 : i32, i32
  }
  func.func @transform_9(%arg0: i32) -> (i32, i32) {
    %c0_i32 = arith.constant 0 : i32
    %c0_i32_0 = arith.constant 0 : i32
    %c0_i32_1 = arith.constant 0 : i32
    return %c0_i32, %c0_i32_0 : i32, i32
  }
  func.func @transform_10(%arg0: i32) -> (i32, i32) {
    %c0_i32 = arith.constant 0 : i32
    %c0_i32_0 = arith.constant 0 : i32
    %c0_i32_1 = arith.constant 0 : i32
    return %c0_i32, %c0_i32_0 : i32, i32
  }
  func.func @transform_11(%arg0: i32) -> (i32, i32) {
    %c0_i32 = arith.constant 0 : i32
    %c0_i32_0 = arith.constant 0 : i32
    %c0_i32_1 = arith.constant 0 : i32
    return %c0_i32, %c0_i32_0 : i32, i32
  }
  func.func @transform_12(%arg0: i32) -> (i32, i32) {
    %c0_i32 = arith.constant 0 : i32
    %c0_i32_0 = arith.constant 0 : i32
    %c0_i32_1 = arith.constant 0 : i32
    return %c0_i32, %c0_i32_0 : i32, i32
  }
  func.func @transform_13(%arg0: i32) -> (i32, i32) {
    %c0_i32 = arith.constant 0 : i32
    %c0_i32_0 = arith.constant 0 : i32
    return %arg0, %c0_i32 : i32, i32
  }
  func.func @transform_14(%arg0: i32) -> (i32, i32) {
    %c0_i32 = arith.constant 0 : i32
    %c0_i32_0 = arith.constant 0 : i32
    return %arg0, %c0_i32 : i32, i32
  }
}

</mosaic_0001>

<bundles_post_ra>
// kernel: ae_forward.1
= control target key start
LH: loop header
LB: loop body
LE: loop exit
PB: predicated region body
PF: predicated region fallthrough
CT: control target
= control target key end

     0   :  { %s5440_s0 = inlined_call_operand.vmem [shape: f32[500,256], index: 0, kind: input, shape index: {}]   ;;  %s5441_s1 = inlined_call_operand.vmem [shape: bf16[256,256], index: 1, kind: input, shape index: {}]   ;;  %s5442_s2 = inlined_call_operand.vmem [shape: f32[1,256], index: 2, kind: input, shape index: {}]   ;;  %s5443_s3 = inlined_call_operand.vmem [shape: bf16[256,256], index: 3, kind: input, shape index: {}]   ;;  %s5444_s4 = inlined_call_operand.vmem [shape: f32[1,256], index: 4, kind: input, shape index: {}]   ;;  %s5445_s5 = inlined_call_operand.vmem [shape: bf16[256,8], index: 5, kind: input, shape index: {}]   ;;  %s5446_s6 = inlined_call_operand.vmem [shape: f32[1,8], index: 6, kind: input, shape index: {}]   ;;  %s5447_s7 = inlined_call_operand.vmem [shape: bf16[256,256], index: 7, kind: input, shape index: {}]   ;;  %s5448_s8 = inlined_call_operand.vmem [shape: f32[1,256], index: 8, kind: input, shape index: {}]   ;;  %s5449_s9 = inlined_call_operand.vmem [shape: bf16[256,256], index: 9, kind: input, shape index: {}]   ;;  %s5450_s10 = inlined_call_operand.vmem [shape: f32[1,256], index: 10, kind: input, shape index: {}]   ;;  %s5451_s11 = inlined_call_operand.vmem [shape: bf16[256,256], index: 11, kind: input, shape index: {}]   ;;  %s5452_s12 = inlined_call_operand.vmem [shape: f32[1,256], index: 12, kind: input, shape index: {}]   ;;  %s5453_s13 = inlined_call_operand.vmem [shape: f32[500,256], index: 13, kind: output, shape index: {0}]   ;;  %s5454_s14 = inlined_call_operand.vmem [shape: f32[500,8], index: 14, kind: output, shape index: {1}]  }
   0x1   :  { %5457 = sst [smem:[#allocation6_spill]] %s5440_s0 }
   0x2   :  { %5458 = sst [smem:[#allocation7_spill]] %s5441_s1 }
   0x3   :  { %5459 = sst [smem:[#allocation8_spill]] %s5442_s2 }
   0x4   :  { %5460 = sst [smem:[#allocation9_spill]] %s5443_s3 }
   0x5   :  { %s4305_s29 = smov 0   ;;  %s4307_s30 = smov 0  }
   0x6   :  { %s4309_s15 = smov 0  }
   0x7 LB: > { %5461 = sst [smem:[#allocation4_spill]] %s4160_s30  ;;  %s4318_s16 = sadd.s32 4294967295, %s4164_s15   ;;  %s4164_s15 = sphi %s4309_s15, %s5479_s15   ;;  %s4160_s30 = sphi %s4307_s30, %s5478_s30   ;;  %s4156_s29 = sphi %s4305_s29, %s5477_s29  }
   0x8   : > { %s4320_s17 = sadd.s32 1, %s4164_s15   ;;  %s310_s19 = sadd.s32 1, %s4160_s30 }
   0x9   : > { %s307_s18 = ssub.s32 %s4164_s15, %s4320_s17  ;;  %p320_p1 = scmp.ne.s32.totalorder %s4160_s30, %s4156_s29 }
   0xa   : > { %p308_p0 = scmp.eq.s32.totalorder %s307_s18, 0  ;;  %p321_p2 = scmp.eq.s32.totalorder %s4318_s16, 3 }
   0xb   : > { %p3284_p3 = scmp.ge.s32.totalorder %s4164_s15, 1  ;;  %p427_p5 = scmp.lt.s32.totalorder %s4164_s15, 5 }
   0xc   : > { %s4328_s20 = scalar_select %p308_p0, %s4160_s30, %s310_s19  }
   0xd   : > { %p4330_p4 = por %p321_p2, %p320_p1  ;;  %p428_p6 = pnand %p3284_p3, %p427_p5 }
   0xe   : > { %5462 = sst [smem:[#allocation5_spill]] %s4328_s20  ;;  %s5464_s1 = sld [smem:[#allocation7_spill]] (!%p428_p6)  ;;  %vm1521_vm0 = vcmask (!%p428_p6), 64512  }
   0xf   : > { %431 = sbr.rel (%p428_p6) target bundleno = 1398 (0x576), region = 72  ;;  %s4350_s22 = sshll.u32 (!%p428_p6), %s4318_s16, 4 }
  0x10   : > { %p488_p7 = scmp.lt.s32.totalorder (!%p428_p6), %s4350_s22, 62  ;;  %s5465_s0 = sld [smem:[#allocation6_spill]] (!%p428_p6) }
  0x11   : > { %s5466_s3 = sld [smem:[#allocation9_spill]] (!%p428_p6)  ;;  %s5467_s2 = sld [smem:[#allocation8_spill]] (!%p428_p6) }
  0x12   : > { %s5456_s25 = sand.u32 (!%p428_p6), 1, %s4156_s29  }
  0x13   : > { %s3286_s26 = sshll.u32 (!%p428_p6), %s5456_s25, 7 }
  0x14   : > { %v3726_v0 = vld [vmem:[%s5464_s1 + $0x4] ss:$8 sps:$4 sm:$0xff] (!%p428_p6)   ;;  %v3728_v1 = vld [vmem:[%s5464_s1] ss:$8 sps:$4 sm:$0xff] (!%p428_p6)   ;;  %v3729_v2 = vld [vmem:[%s5464_s1 + $0x14] ss:$8 sps:$4 sm:$0xff] (!%p428_p6)  }
  0x15   : > { %763 = vmatprep.subr.bf16.mxu0 (!%p428_p6), %v3726_v0  ;;  %v3731_v3 = vld [vmem:[%s5464_s1 + $0x10] ss:$8 sps:$4 sm:$0xff] (!%p428_p6)   ;;  %v3732_v4 = vld [vmem:[%s5464_s1 + $0x24] ss:$8 sps:$4 sm:$0xff] (!%p428_p6)   ;;  %v3734_v5 = vld [vmem:[%s5464_s1 + $0x20] ss:$8 sps:$4 sm:$0xff] (!%p428_p6)  }
  0x16   : > { %764 = vmatpush1.bf16.msra.mxu0 %v3728_v1  ;;  %v3735_v6 = vld [vmem:[%s5464_s1 + $0x34] ss:$8 sps:$4 sm:$0xff]   ;;  %v3737_v7 = vld [vmem:[%s5464_s1 + $0x30] ss:$8 sps:$4 sm:$0xff]   ;;  %s489_s18 = scalar_select %p488_p7, %s4350_s22, 62 }
  0x17   : > { %765 = vmatprep.subr.bf16.mxu0 %v3729_v2  ;;  %v3738_v8 = vld [vmem:[%s5464_s1 + $0x44] ss:$8 sps:$4 sm:$0xff]   ;;  %v3740_v9 = vld [vmem:[%s5464_s1 + $0x40] ss:$8 sps:$4 sm:$0xff]   ;;  %v3741_v10 = vld [vmem:[%s5464_s1 + $0x54] ss:$8 sps:$4 sm:$0xff]  }
  0x18   : > { %s3501_s20 = sshll.u32 %s489_s18, 4  ;;  %v3743_v11 = vld [vmem:[%s5464_s1 + $0x50] ss:$8 sps:$4 sm:$0xff]   ;;  %v3744_v12 = vld [vmem:[%s5464_s1 + $0x64] ss:$8 sps:$4 sm:$0xff]   ;;  %s5000_s19 = scalar_lea.vmem [#allocation3], %s3286_s26  }
  0x19   : > { %s4375_s28 = scalar_lea.vmem %s5465_s0, %s3501_s20  ;;  %v3746_v16 = vld [vmem:[%s5464_s1 + $0x60] ss:$8 sps:$4 sm:$0xff]   ;;  %v3747_v17 = vld [vmem:[%s5464_s1 + $0x74] ss:$8 sps:$4 sm:$0xff]   ;;  %v3749_v18 = vld [vmem:[%s5464_s1 + $0x70] ss:$8 sps:$4 sm:$0xff]  }
  0x1a   : > { %766 = vmatpush1.bf16.msra.mxu0 %v3731_v3  ;;  %v512_v13 = vld [vmem:[%s4375_s28 + $0x8] sm:$0xff]  ;;  %v514_v14 = vld [vmem:[%s4375_s28 + $0x18] sm:$0xff]  ;;  %v511_v50 = vld [vmem:[%s4375_s28] sm:$0xff]  ;;  %s5468_s18 = sand.u32 1, %s4156_s29   ;;  %s2821_s24 = ssub.s32 (%p4330_p4), 63, %s4350_s22 }
  0x1b   : > { %767 = vmatprep.subr.bf16.mxu0 %v3732_v4  ;;  %v544_v15 = vpack.c.bf16 %v514_v14, %v512_v13  ;;  %v3750_v19 = vld [vmem:[%s5464_s1 + $0x84] ss:$8 sps:$4 sm:$0xff]   ;;  %v3752_v20 = vld [vmem:[%s5464_s1 + $0x80] ss:$8 sps:$4 sm:$0xff]   ;;  %v3753_v21 = vld [vmem:[%s5464_s1 + $0x94] ss:$8 sps:$4 sm:$0xff]  }
  0x1c   : > { %v3774_v22 = vld [vmem:[%s5466_s3 + $0x4] ss:$8 sps:$4 sm:$0xff]   ;;  %v3776_v23 = vld [vmem:[%s5466_s3] ss:$8 sps:$4 sm:$0xff]   ;;  %v3755_v24 = vld [vmem:[%s5464_s1 + $0x90] ss:$8 sps:$4 sm:$0xff]  }
  0x1d   : > { %795 = vmatprep.mubr.bf16.mxu0 %v544_v15  ;;  %1128 = vmatprep.subr.bf16.mxu1 %v3774_v22  ;;  %v3777_v25 = vld [vmem:[%s5466_s3 + $0x14] ss:$8 sps:$4 sm:$0xff]   ;;  %v3756_v26 = vld [vmem:[%s5464_s1 + $0xa4] ss:$8 sps:$4 sm:$0xff]   ;;  %v3779_v27 = vld [vmem:[%s5466_s3 + $0x10] ss:$8 sps:$4 sm:$0xff]  }
  0x1e   : > { %768 = vmatpush1.bf16.msra.mxu0 %v3734_v5  ;;  %1129 = vmatpush1.bf16.msra.mxu1 %v3776_v23  ;;  %v3780_v28 = vld [vmem:[%s5466_s3 + $0x24] ss:$8 sps:$4 sm:$0xff]   ;;  %v3758_v29 = vld [vmem:[%s5464_s1 + $0xa0] ss:$8 sps:$4 sm:$0xff]   ;;  %v3759_v30 = vld [vmem:[%s5464_s1 + $0xb4] ss:$8 sps:$4 sm:$0xff]  }
  0x1f   : > { %769 = vmatprep.subr.bf16.mxu0 %v3735_v6  ;;  %1130 = vmatprep.subr.bf16.mxu1 %v3777_v25  ;;  %v3782_v31 = vld [vmem:[%s5466_s3 + $0x20] ss:$8 sps:$4 sm:$0xff]   ;;  %v3783_v32 = vld [vmem:[%s5466_s3 + $0x34] ss:$8 sps:$4 sm:$0xff]   ;;  %v3761_v33 = vld [vmem:[%s5464_s1 + $0xb0] ss:$8 sps:$4 sm:$0xff]  }
  0x20   : > { %v3762_v34 = vld [vmem:[%s5464_s1 + $0xc4] ss:$8 sps:$4 sm:$0xff]   ;;  %v3785_v35 = vld [vmem:[%s5466_s3 + $0x30] ss:$8 sps:$4 sm:$0xff]   ;;  %v3764_v37 = vld [vmem:[%s5464_s1 + $0xc0] ss:$8 sps:$4 sm:$0xff]  }
  0x21   : > { %v3786_v36 = vld [vmem:[%s5466_s3 + $0x44] ss:$8 sps:$4 sm:$0xff]   ;;  %v3765_v38 = vld [vmem:[%s5464_s1 + $0xd4] ss:$8 sps:$4 sm:$0xff]   ;;  %v3788_v39 = vld [vmem:[%s5466_s3 + $0x40] ss:$8 sps:$4 sm:$0xff]  }
  0x22   : > { %770 = vmatpush1.bf16.msra.mxu0 %v3737_v7  ;;  %1131 = vmatpush1.bf16.msra.mxu1 %v3779_v27  ;;  %v3789_v40 = vld [vmem:[%s5466_s3 + $0x54] ss:$8 sps:$4 sm:$0xff]   ;;  %v3767_v41 = vld [vmem:[%s5464_s1 + $0xd0] ss:$8 sps:$4 sm:$0xff]   ;;  %v3768_v42 = vld [vmem:[%s5464_s1 + $0xe4] ss:$8 sps:$4 sm:$0xff]  }
  0x23   : > { %771 = vmatprep.subr.bf16.mxu0 %v3738_v8  ;;  %1132 = vmatprep.subr.bf16.mxu1 %v3780_v28  ;;  %v3791_v43 = vld [vmem:[%s5466_s3 + $0x50] ss:$8 sps:$4 sm:$0xff]   ;;  %v3792_v44 = vld [vmem:[%s5466_s3 + $0x64] ss:$8 sps:$4 sm:$0xff]   ;;  %v3770_v45 = vld [vmem:[%s5464_s1 + $0xe0] ss:$8 sps:$4 sm:$0xff]  }
  0x24   : > { %v3794_v46 = vld [vmem:[%s5466_s3 + $0x60] ss:$8 sps:$4 sm:$0xff]   ;;  %v3771_v47 = vld [vmem:[%s5464_s1 + $0xf4] ss:$8 sps:$4 sm:$0xff]   ;;  %v3773_v49 = vld [vmem:[%s5464_s1 + $0xf0] ss:$8 sps:$4 sm:$0xff]  }
  0x25   : > { %v3795_v48 = vld [vmem:[%s5466_s3 + $0x74] ss:$8 sps:$4 sm:$0xff]   ;;  %v3797_v52 = vld [vmem:[%s5466_s3 + $0x70] ss:$8 sps:$4 sm:$0xff]   ;;  %v516_v53 = vld [vmem:[%s4375_s28 + $0x28] sm:$0xff]  ;;  %s3504_s30 = sshll.u32 (%p4330_p4), %s4318_s16, 8 }
  0x26   : > { %772 = vmatpush1.bf16.msra.mxu0 %v3740_v9  ;;  %1133 = vmatpush1.bf16.msra.mxu1 %v3782_v31  ;;  %v513_v51 = vld [vmem:[%s4375_s28 + $0x10] sm:$0xff]  ;;  %v518_v54 = vld [vmem:[%s4375_s28 + $0x38] sm:$0xff]  ;;  %v3798_v55 = vld [vmem:[%s5466_s3 + $0x84] ss:$8 sps:$4 sm:$0xff]   ;;  %p2822_p8 = scmp.lt.s32.totalorder (%p4330_p4), %s2821_s24, 16  ;;  %s5214_s27 = scalar_lea.vmem (%p4330_p4), %s5453_s13, %s3504_s30  }
  0x27   : > { %773 = vmatprep.subr.bf16.mxu0 %v3741_v10  ;;  %1134 = vmatprep.subr.bf16.mxu1 %v3783_v32  ;;  %v3800_v56 = vld [vmem:[%s5466_s3 + $0x80] ss:$8 sps:$4 sm:$0xff]   ;;  %v543_v57 = vpack.c.bf16 %v513_v51, %v511_v50  ;;  %v3801_v58 = vld [vmem:[%s5466_s3 + $0x94] ss:$8 sps:$4 sm:$0xff]   ;;  %v546_v59 = vpack.c.bf16 %v518_v54, %v516_v53  ;;  %v3803_v62 = vld [vmem:[%s5466_s3 + $0x90] ss:$8 sps:$4 sm:$0xff]  }
  0x28   : > { %v515_v60 = vld [vmem:[%s4375_s28 + $0x20] sm:$0xff]  ;;  %v517_v61 = vld [vmem:[%s4375_s28 + $0x30] sm:$0xff]  ;;  %v520_v63 = vld [vmem:[%s4375_s28 + $0x48] sm:$0xff] }
  0x29   : > { %v522_v0 = vld [vmem:[%s4375_s28 + $0x58] sm:$0xff]  ;;  %v3804_v1 = vld [vmem:[%s5466_s3 + $0xa4] ss:$8 sps:$4 sm:$0xff]   ;;  %v3806_v2 = vld [vmem:[%s5466_s3 + $0xa0] ss:$8 sps:$4 sm:$0xff]   ;;  %v545_v3 = vpack.c.bf16 %v517_v61, %v515_v60  ;;  %v593_v60 = vlaneseq }
  0x2a   : > { %774 = vmatpush1.bf16.msra.mxu0 %v3743_v11  ;;  %1135 = vmatpush1.bf16.msra.mxu1 %v3785_v35  ;;  %v3807_v4 = vld [vmem:[%s5466_s3 + $0xb4] ss:$8 sps:$4 sm:$0xff]   ;;  %v548_v5 = vpack.c.bf16 %v522_v0, %v520_v63  ;;  %v519_v6 = vld [vmem:[%s4375_s28 + $0x40] sm:$0xff]  ;;  %v3809_v8 = vld [vmem:[%s5466_s3 + $0xb0] ss:$8 sps:$4 sm:$0xff]  }
  0x2b   : > { %775 = vmatprep.subr.bf16.mxu0 %v3744_v12  ;;  %1136 = vmatprep.subr.bf16.mxu1 %v3786_v36  ;;  %v521_v7 = vld [vmem:[%s4375_s28 + $0x50] sm:$0xff]  ;;  %v524_v9 = vld [vmem:[%s4375_s28 + $0x68] sm:$0xff]  ;;  %v526_v10 = vld [vmem:[%s4375_s28 + $0x78] sm:$0xff]  ;;  %v594_v61 = vshrl.u32 %v593_v60, 7 }
  0x2c   : > { %v3810_v11 = vld [vmem:[%s5466_s3 + $0xc4] ss:$8 sps:$4 sm:$0xff]   ;;  %v3812_v12 = vld [vmem:[%s5466_s3 + $0xc0] ss:$8 sps:$4 sm:$0xff]   ;;  %v547_v13 = vpack.c.bf16 %v521_v7, %v519_v6  ;;  %v3813_v14 = vld [vmem:[%s5466_s3 + $0xd4] ss:$8 sps:$4 sm:$0xff]   ;;  %v550_v15 = vpack.c.bf16 %v526_v10, %v524_v9 }
  0x2d   : > { %v527_v22 = vld [vmem:[%s4375_s28 + $0x80] sm:$0xff]  ;;  %v529_v23 = vld [vmem:[%s4375_s28 + $0x90] sm:$0xff]  ;;  %v534_v25 = vld [vmem:[%s4375_s28 + $0xb8] sm:$0xff]  ;;  %v4609_v0 = vsub.s32 1, %v594_v61 }
  0x2e   : > { %776 = vmatpush1.bf16.msra.mxu0 %v3746_v16  ;;  %1137 = vmatpush1.bf16.msra.mxu1 %v3788_v39  ;;  %v523_v16 = vld [vmem:[%s4375_s28 + $0x60] sm:$0xff]  ;;  %v538_v31 = vld [vmem:[%s4375_s28 + $0xd8] sm:$0xff]  ;;  %v537_v35 = vld [vmem:[%s4375_s28 + $0xd0] sm:$0xff] }
  0x2f   : > { %777 = vmatprep.subr.bf16.mxu0 %v3747_v17  ;;  %1138 = vmatprep.subr.bf16.mxu1 %v3789_v40  ;;  %v525_v17 = vld [vmem:[%s4375_s28 + $0x70] sm:$0xff]  ;;  %v531_v28 = vld [vmem:[%s4375_s28 + $0xa0] sm:$0xff]  ;;  %v540_v36 = vld [vmem:[%s4375_s28 + $0xe8] sm:$0xff] }
  0x30   : > { %v539_v40 = vld [vmem:[%s4375_s28 + $0xe0] sm:$0xff]  ;;  %v3854_v51 = vld [vmem:[%s5445_s5 + $0x48] sm:$0xff]   ;;  %v3859_v53 = vld [vmem:[%s5445_s5 + $0x50] sm:$0xff]  }
  0x31   : > { %v3850_v50 = vld [vmem:[%s5445_s5] sm:$0xff]   ;;  %v3860_v54 = vld [vmem:[%s5445_s5 + $0x10] sm:$0xff]  }
  0x32   : > { %778 = vmatpush1.bf16.msra.mxu0 %v3749_v18  ;;  %1139 = vmatpush1.bf16.msra.mxu1 %v3791_v43  ;;  %v528_v18 = vld [vmem:[%s4375_s28 + $0x88] sm:$0xff]  ;;  %v3815_v43 = vld [vmem:[%s5466_s3 + $0xd0] ss:$8 sps:$4 sm:$0xff]   ;;  %v591_v63 = vld [vmem:[%s5467_s2] sm:$0x3] }
  0x33   : > { %779 = vmatprep.subr.bf16.mxu0 %v3750_v19  ;;  %1140 = vmatprep.subr.bf16.mxu1 %v3792_v44  ;;  %v530_v19 = vld [vmem:[%s4375_s28 + $0x98] sm:$0xff]  ;;  %v3816_v44 = vld [vmem:[%s5466_s3 + $0xe4] ss:$8 sps:$4 sm:$0xff]  }
  0x36   : > { %780 = vmatpush1.bf16.msra.mxu0 %v3752_v20  ;;  %1141 = vmatpush1.bf16.msra.mxu1 %v3794_v46  ;;  %v549_v20 = vpack.c.bf16 %v525_v17, %v523_v16  ;;  %v3819_v46 = vld [vmem:[%s5466_s3 + $0xf4] ss:$8 sps:$4 sm:$0xff]  }
  0x37   : > { %781 = vmatprep.subr.bf16.mxu0 %v3753_v21  ;;  %1142 = vmatprep.subr.bf16.mxu1 %v3795_v48  ;;  %v552_v21 = vpack.c.bf16 %v530_v19, %v528_v18  ;;  %v3824_v48 = vld [vmem:[%s5447_s7 + $0x4] ss:$8 sps:$4 sm:$0xff]   ;;  %v3822_v18 = vld [vmem:[%s5447_s7] ss:$8 sps:$4 sm:$0xff]  }
  0x3a   : > { %782 = vmatpush1.bf16.msra.mxu0 %v3755_v24  ;;  %1143 = vmatpush1.bf16.msra.mxu1 %v3797_v52  ;;  %v532_v24 = vld [vmem:[%s4375_s28 + $0xa8] sm:$0xff] }
  0x3b   : > { %783 = vmatprep.subr.bf16.mxu0 %v3756_v26  ;;  %1144 = vmatprep.subr.bf16.mxu1 %v3798_v55  ;;  %v551_v26 = vpack.c.bf16 %v529_v23, %v527_v22  ;;  %v554_v27 = vpack.c.bf16 %v534_v25, %v532_v24  ;;  %v3855_v52 = vld [vmem:[%s5445_s5 + $0x8] sm:$0xff]   ;;  %v3864_v55 = vld [vmem:[%s5445_s5 + $0x58] sm:$0xff]  }
  0x3e   : > { %784 = vmatpush1.bf16.msra.mxu0 %v3758_v29  ;;  %1145 = vmatpush1.bf16.msra.mxu1 %v3800_v56  ;;  %v533_v29 = vld [vmem:[%s4375_s28 + $0xb0] sm:$0xff]  ;;  %v3865_v56 = vld [vmem:[%s5445_s5 + $0x18] sm:$0xff]  }
  0x3f   : > { %785 = vmatprep.subr.bf16.mxu0 %v3759_v30  ;;  %1146 = vmatprep.subr.bf16.mxu1 %v3801_v58  ;;  %v536_v30 = vld [vmem:[%s4375_s28 + $0xc8] sm:$0xff]  ;;  %v553_v32 = vpack.c.bf16 %v533_v29, %v531_v28  ;;  %v3870_v58 = vld [vmem:[%s5445_s5 + $0x20] sm:$0xff]  }
  0x42   : > { %786 = vmatpush1.bf16.msra.mxu0 %v3761_v33  ;;  %1147 = vmatpush1.bf16.msra.mxu1 %v3803_v62  ;;  %v556_v33 = vpack.c.bf16 %v538_v31, %v536_v30  ;;  %v4604_v62 = vsub.s32 0, %v594_v61  ;;  %v3830_v30 = vld [vmem:[%s5447_s7 + $0x24] ss:$8 sps:$4 sm:$0xff]  }
  0x43   : > { %787 = vmatprep.subr.bf16.mxu0 %v3762_v34  ;;  %1148 = vmatprep.subr.bf16.mxu1 %v3804_v1  ;;  %v535_v34 = vld [vmem:[%s4375_s28 + $0xc0] sm:$0xff] }
  0x44   : > { %v4612_v1 = vrot.slane %v591_v63, %v4604_v62 }
  0x46   : > { %788 = vmatpush1.bf16.msra.mxu0 %v3764_v37  ;;  %1149 = vmatpush1.bf16.msra.mxu1 %v3806_v2  ;;  %v542_v37 = vld [vmem:[%s4375_s28 + $0xf8] sm:$0xff]  ;;  %v4615_v2 = vrot.slane %v591_v63, %v4609_v0 }
  0x47   : > { %789 = vmatprep.subr.bf16.mxu0 %v3765_v38  ;;  %1150 = vmatprep.subr.bf16.mxu1 %v3807_v4  ;;  %v555_v38 = vpack.c.bf16 %v537_v35, %v535_v34  ;;  %v558_v39 = vpack.c.bf16 %v542_v37, %v540_v36  ;;  %v3828_v36 = vld [vmem:[%s5447_s7 + $0x20] ss:$8 sps:$4 sm:$0xff]  }
  0x4a   : > { %790 = vmatpush1.bf16.msra.mxu0 %v3767_v41  ;;  %1151 = vmatpush1.bf16.msra.mxu1 %v3809_v8  ;;  %v541_v41 = vld [vmem:[%s4375_s28 + $0xf0] sm:$0xff]  ;;  %s3285_s28 = sshll.u32 %s5468_s18, 8 }
  0x4b   : > { %791 = vmatprep.subr.bf16.mxu0 %v3768_v42  ;;  %1152 = vmatprep.subr.bf16.mxu1 %v3810_v11  ;;  %v557_v42 = vpack.c.bf16 %v541_v41, %v539_v40  ;;  %s5161_s29 = scalar_lea.vmem [#allocation2], %s3285_s28  }
  0x4e   : > { %792 = vmatpush1.bf16.msra.mxu0 %v3770_v45  ;;  %1153 = vmatpush1.bf16.msra.mxu1 %v3812_v12  ;;  %v3818_v45 = vld [vmem:[%s5466_s3 + $0xe0] ss:$8 sps:$4 sm:$0xff]  }
  0x4f   : > { %793 = vmatprep.subr.bf16.mxu0 %v3771_v47  ;;  %1154 = vmatprep.subr.bf16.mxu1 %v3813_v14  ;;  %v3821_v47 = vld [vmem:[%s5466_s3 + $0xf0] ss:$8 sps:$4 sm:$0xff]  }
  0x52   : > { %794 = vmatpush1.bf16.msra.mxu0 %v3773_v49  ;;  %1155 = vmatpush1.bf16.msra.mxu1 %v3815_v43  ;;  %v3849_v49 = vld [vmem:[%s5445_s5 + $0x40] sm:$0xff]  }
  0x53   : > { %1156 = vmatprep.subr.bf16.mxu1 %v3816_v44  ;;  %3510 = vmatprep.subr.bf16.mxu0 %v3849_v49 }
  0x55   : > { %796 = vmatmul.mubr.bf16.vlgmr.msra.gmra.mrb[0].mxu0 %v543_v57  ;;  %v3869_v57 = vld [vmem:[%s5445_s5 + $0x60] sm:$0xff]  }
  0x56   : > { %805 = vmatprep.mubr.bf16.mxu0 %v546_v59  ;;  %1157 = vmatpush1.bf16.msra.mxu1 %v3818_v45  ;;  %v3874_v59 = vld [vmem:[%s5445_s5 + $0x68] sm:$0xff]   ;;  %v3831_v45 = vld [vmem:[%s5447_s7 + $0x30] ss:$8 sps:$4 sm:$0xff]  }
  0x57   : > { %1158 = vmatprep.subr.bf16.mxu1 %v3819_v46  ;;  %3511 = vmatpush3.bf16.msra.mxu0 %v3850_v50 }
  0x58   : > { %3512 = vmatprep.subr.bf16.mxu0 %v3854_v51 }
  0x5a   : > { %1159 = vmatpush1.bf16.msra.mxu1 %v3821_v47 }
  0x5b   : > { %1742 = vmatprep.subr.bf16.mxu1 %v3824_v48  ;;  %3513 = vmatpush3.bf16.msra.mxu0 %v3855_v52  ;;  %v3836_v48 = vld [vmem:[%s5447_s7 + $0x44] ss:$8 sps:$4 sm:$0xff]  }
  0x5c   : > { %3514 = vmatprep.subr.bf16.mxu0 %v3859_v53 }
  0x5d   : > { %806 = vmatmul.mubr.bf16.gmra.mrb[4].mxu0 %v545_v3 }
  0x5e   : > { %815 = vmatprep.mubr.bf16.mxu0 %v548_v5 }
  0x5f   : > { %3515 = vmatpush3.bf16.msra.mxu0 %v3860_v54  ;;  %v3834_v54 = vld [vmem:[%s5447_s7 + $0x40] ss:$8 sps:$4 sm:$0xff]  }
  0x60   : > { %3516 = vmatprep.subr.bf16.mxu0 %v3864_v55 }
  0x63   : > { %3517 = vmatpush3.bf16.msra.mxu0 %v3865_v56 }
  0x64   : > { %3518 = vmatprep.subr.bf16.mxu0 %v3869_v57  ;;  %v3839_v57 = vld [vmem:[%s5447_s7 + $0x54] ss:$8 sps:$4 sm:$0xff]  }
  0x65   : > { %816 = vmatmul.mubr.bf16.gmra.mrb[8].mxu0 %v547_v13 }
  0x66   : > { %825 = vmatprep.mubr.bf16.mxu0 %v550_v15 }
  0x67   : > { %3519 = vmatpush3.bf16.msra.mxu0 %v3870_v58 }
  0x68   : > { %3520 = vmatprep.subr.bf16.mxu0 %v3874_v59 }
  0x6d   : > { %826 = vmatmul.mubr.bf16.gmra.mrb[12].mxu0 %v549_v20 }
  0x6e   : > { %835 = vmatprep.mubr.bf16.mxu0 %v552_v21  ;;  %v3827_v21 = vld [vmem:[%s5447_s7 + $0x14] ss:$8 sps:$4 sm:$0xff]  }
  0x75   : > { %836 = vmatmul.mubr.bf16.gmra.mrb[16].mxu0 %v551_v26 }
  0x76   : > { %845 = vmatprep.mubr.bf16.mxu0 %v554_v27  ;;  %v3825_v27 = vld [vmem:[%s5447_s7 + $0x10] ss:$8 sps:$4 sm:$0xff]  }
  0x7d   : > { %846 = vmatmul.mubr.bf16.gmra.mrb[20].mxu0 %v553_v32 }
  0x7e   : > { %855 = vmatprep.mubr.bf16.mxu0 %v556_v33 }
  0x85   : > { %856 = vmatmul.mubr.bf16.gmra.mrb[24].mxu0 %v555_v38 }
  0x86   : > { %865 = vmatprep.mubr.bf16.mxu0 %v558_v39  ;;  %v3833_v39 = vld [vmem:[%s5447_s7 + $0x34] ss:$8 sps:$4 sm:$0xff]  }
  0x8d   : > { %866 = vmatmul.mubr.bf16.gmra.mrb[28].mxu0 %v557_v42 }
 0x128   : > { %v797_v3 = vpop.f32.mrb[0].mxu0 }
 0x129   : > { %v798_v4 = vadd.f32 %v797_v3, %v4612_v1  ;;  %v799_v5 = vpop.f32.mrb[1].mxu0  ;;  %v3837_v3 = vld [vmem:[%s5447_s7 + $0x50] ss:$8 sps:$4 sm:$0xff]  }
 0x12a   : > { %v800_v6 = vadd.f32 %v799_v5, %v4615_v2  ;;  %v801_v7 = vpop.f32.mrb[2].mxu0 }
 0x12b   : > { %v802_v8 = vadd.f32 %v801_v7, %v4612_v1  ;;  %v803_v9 = vpop.f32.mrb[3].mxu0  ;;  %v876_v11 = vmax.f32 %v798_v4, 0.0 }
 0x12c   : > { %v804_v10 = vadd.f32 %v803_v9, %v4615_v2  ;;  %v877_v13 = vmax.f32 %v800_v6, 0.0  ;;  %v3842_v6 = vld [vmem:[%s5447_s7 + $0x64] ss:$8 sps:$4 sm:$0xff]  }
 0x12d   : > { %v878_v12 = vmax.f32 %v802_v8, 0.0 }
 0x12e   : > { %v879_v14 = vmax.f32 %v804_v10, 0.0 }
 0x12f   : > { %v908_v15 = vpack.c.bf16 %v878_v12, %v876_v11  ;;  %v3840_v12 = vld [vmem:[%s5447_s7 + $0x60] ss:$8 sps:$4 sm:$0xff]  }
 0x130   : > { %v807_v16 = vpop.f32.mrb[4].mxu0  ;;  %v909_v17 = vpack.c.bf16 %v879_v14, %v877_v13 }
 0x131   : > { %v808_v19 = vadd.f32 %v807_v16, %v4612_v1  ;;  %v809_v20 = vpop.f32.mrb[5].mxu0 }
 0x132   : > { %v810_v22 = vadd.f32 %v809_v20, %v4615_v2  ;;  %v811_v23 = vpop.f32.mrb[6].mxu0  ;;  %1160 = vmatprep.mubr.bf16.mxu1 %v909_v17 }
 0x133   : > { %v812_v24 = vadd.f32 %v811_v23, %v4612_v1  ;;  %v813_v25 = vpop.f32.mrb[7].mxu0  ;;  %1161 = vmatmul.mubr.bf16.vlgmr.msra.gmra.mrb[0].mxu1 %v908_v15  ;;  %v880_v28 = vmax.f32 %v808_v19, 0.0  ;;  %v3845_v15 = vld [vmem:[%s5447_s7 + $0x74] ss:$8 sps:$4 sm:$0xff]  }
 0x134   : > { %v814_v26 = vadd.f32 %v813_v25, %v4615_v2  ;;  %1743 = vmatpush1.bf16.msra.mxu1 %v3822_v18  ;;  %v881_v31 = vmax.f32 %v810_v22, 0.0 }
 0x135   : > { %v882_v29 = vmax.f32 %v812_v24, 0.0  ;;  %1744 = vmatprep.subr.bf16.mxu1 %v3827_v21  ;;  %v3843_v21 = vld [vmem:[%s5447_s7 + $0x70] ss:$8 sps:$4 sm:$0xff]   ;;  %v3848_v24 = vld [vmem:[%s5447_s7 + $0x84] ss:$8 sps:$4 sm:$0xff]  }
 0x136   : > { %v883_v32 = vmax.f32 %v814_v26, 0.0 }
 0x137   : > { %v910_v33 = vpack.c.bf16 %v882_v29, %v880_v28 }
 0x138   : > { %v911_v34 = vpack.c.bf16 %v883_v32, %v881_v31  ;;  %v817_v35 = vpop.f32.mrb[8].mxu0  ;;  %1745 = vmatpush1.bf16.msra.mxu1 %v3825_v27 }
 0x139   : > { %v818_v37 = vadd.f32 %v817_v35, %v4612_v1  ;;  %v819_v38 = vpop.f32.mrb[9].mxu0  ;;  %1746 = vmatprep.subr.bf16.mxu1 %v3830_v30  ;;  %v3846_v30 = vld [vmem:[%s5447_s7 + $0x80] ss:$8 sps:$4 sm:$0xff]  }
 0x13a   : > { %v820_v40 = vadd.f32 %v819_v38, %v4615_v2  ;;  %v821_v41 = vpop.f32.mrb[10].mxu0  ;;  %1170 = vmatprep.mubr.bf16.mxu1 %v911_v34 }
 0x13b   : > { %v822_v42 = vadd.f32 %v821_v41, %v4612_v1  ;;  %v823_v43 = vpop.f32.mrb[11].mxu0  ;;  %1171 = vmatmul.mubr.bf16.gmra.mrb[4].mxu1 %v910_v33  ;;  %v884_v46 = vmax.f32 %v818_v37, 0.0  ;;  %v3853_v33 = vld [vmem:[%s5447_s7 + $0x94] ss:$8 sps:$4 sm:$0xff]  }
 0x13c   : > { %v824_v44 = vadd.f32 %v823_v43, %v4615_v2  ;;  %1747 = vmatpush1.bf16.msra.mxu1 %v3828_v36  ;;  %v885_v49 = vmax.f32 %v820_v40, 0.0 }
 0x13d   : > { %v886_v47 = vmax.f32 %v822_v42, 0.0  ;;  %1748 = vmatprep.subr.bf16.mxu1 %v3833_v39  ;;  %v3851_v39 = vld [vmem:[%s5447_s7 + $0x90] ss:$8 sps:$4 sm:$0xff]   ;;  %v3858_v42 = vld [vmem:[%s5447_s7 + $0xa4] ss:$8 sps:$4 sm:$0xff]  }
 0x13e   : > { %v887_v50 = vmax.f32 %v824_v44, 0.0 }
 0x13f   : > { %v912_v51 = vpack.c.bf16 %v886_v47, %v884_v46 }
 0x140   : > { %v913_v52 = vpack.c.bf16 %v887_v50, %v885_v49  ;;  %v827_v53 = vpop.f32.mrb[12].mxu0  ;;  %1749 = vmatpush1.bf16.msra.mxu1 %v3831_v45 }
 0x141   : > { %v828_v55 = vadd.f32 %v827_v53, %v4612_v1  ;;  %v829_v56 = vpop.f32.mrb[13].mxu0  ;;  %1750 = vmatprep.subr.bf16.mxu1 %v3836_v48  ;;  %v3856_v48 = vld [vmem:[%s5447_s7 + $0xa0] ss:$8 sps:$4 sm:$0xff]  }
 0x142   : > { %v830_v58 = vadd.f32 %v829_v56, %v4615_v2  ;;  %v831_v59 = vpop.f32.mrb[14].mxu0  ;;  %1180 = vmatprep.mubr.bf16.mxu1 %v913_v52 }
 0x143   : > { %v832_v60 = vadd.f32 %v831_v59, %v4612_v1  ;;  %v833_v61 = vpop.f32.mrb[15].mxu0  ;;  %1181 = vmatmul.mubr.bf16.gmra.mrb[8].mxu1 %v912_v51  ;;  %v888_v4 = vmax.f32 %v828_v55, 0.0  ;;  %v3863_v51 = vld [vmem:[%s5447_s7 + $0xb4] ss:$8 sps:$4 sm:$0xff]  }
 0x144   : > { %v834_v63 = vadd.f32 %v833_v61, %v4615_v2  ;;  %1751 = vmatpush1.bf16.msra.mxu1 %v3834_v54  ;;  %v889_v7 = vmax.f32 %v830_v58, 0.0 }
 0x145   : > { %v890_v5 = vmax.f32 %v832_v60, 0.0  ;;  %1752 = vmatprep.subr.bf16.mxu1 %v3839_v57  ;;  %v3861_v57 = vld [vmem:[%s5447_s7 + $0xb0] ss:$8 sps:$4 sm:$0xff]   ;;  %v3868_v60 = vld [vmem:[%s5447_s7 + $0xc4] ss:$8 sps:$4 sm:$0xff]  }
 0x146   : > { %v891_v8 = vmax.f32 %v834_v63, 0.0 }
 0x147   : > { %v914_v9 = vpack.c.bf16 %v890_v5, %v888_v4 }
 0x148   : > { %v915_v10 = vpack.c.bf16 %v891_v8, %v889_v7  ;;  %v837_v11 = vpop.f32.mrb[16].mxu0  ;;  %1753 = vmatpush1.bf16.msra.mxu1 %v3837_v3 }
 0x149   : > { %v838_v13 = vadd.f32 %v837_v11, %v4612_v1  ;;  %v839_v14 = vpop.f32.mrb[17].mxu0  ;;  %1754 = vmatprep.subr.bf16.mxu1 %v3842_v6  ;;  %v3866_v6 = vld [vmem:[%s5447_s7 + $0xc0] ss:$8 sps:$4 sm:$0xff]  }
 0x14a   : > { %v840_v16 = vadd.f32 %v839_v14, %v4615_v2  ;;  %v841_v17 = vpop.f32.mrb[18].mxu0  ;;  %1190 = vmatprep.mubr.bf16.mxu1 %v915_v10 }
 0x14b   : > { %v842_v18 = vadd.f32 %v841_v17, %v4612_v1  ;;  %v843_v19 = vpop.f32.mrb[19].mxu0  ;;  %1191 = vmatmul.mubr.bf16.gmra.mrb[12].mxu1 %v914_v9  ;;  %v892_v22 = vmax.f32 %v838_v13, 0.0  ;;  %v3873_v9 = vld [vmem:[%s5447_s7 + $0xd4] ss:$8 sps:$4 sm:$0xff]  }
 0x14c   : > { %v844_v20 = vadd.f32 %v843_v19, %v4615_v2  ;;  %1755 = vmatpush1.bf16.msra.mxu1 %v3840_v12  ;;  %v893_v25 = vmax.f32 %v840_v16, 0.0 }
 0x14d   : > { %v894_v23 = vmax.f32 %v842_v18, 0.0  ;;  %1756 = vmatprep.subr.bf16.mxu1 %v3845_v15  ;;  %v3871_v15 = vld [vmem:[%s5447_s7 + $0xd0] ss:$8 sps:$4 sm:$0xff]  }
 0x14e   : > { %v895_v26 = vmax.f32 %v844_v20, 0.0 }
 0x14f   : > { %v916_v27 = vpack.c.bf16 %v894_v23, %v892_v22  ;;  %v3879_v22 = vld [vmem:[%s5445_s5 + $0x70] sm:$0xff]   ;;  %v3876_v23 = vld [vmem:[%s5447_s7 + $0xe0] ss:$8 sps:$4 sm:$0xff]  }
 0x150   : > { %v917_v28 = vpack.c.bf16 %v895_v26, %v893_v25  ;;  %v847_v29 = vpop.f32.mrb[20].mxu0  ;;  %1757 = vmatpush1.bf16.msra.mxu1 %v3843_v21  ;;  %v3883_v25 = vld [vmem:[%s5447_s7 + $0xf4] ss:$8 sps:$4 sm:$0xff]  }
 0x151   : > { %v848_v31 = vadd.f32 %v847_v29, %v4612_v1  ;;  %v849_v32 = vpop.f32.mrb[21].mxu0  ;;  %1758 = vmatprep.subr.bf16.mxu1 %v3848_v24  ;;  %v3880_v24 = vld [vmem:[%s5445_s5 + $0x30] sm:$0xff]   ;;  %v3884_v26 = vld [vmem:[%s5445_s5 + $0x78] sm:$0xff]   ;;  %v3888_v29 = vld [vmem:[%s5449_s9 + $0x4] ss:$8 sps:$4 sm:$0xff]  }
 0x152   : > { %v850_v34 = vadd.f32 %v849_v32, %v4615_v2  ;;  %v851_v35 = vpop.f32.mrb[22].mxu0  ;;  %1200 = vmatprep.mubr.bf16.mxu1 %v917_v28  ;;  %v3885_v28 = vld [vmem:[%s5445_s5 + $0x38] sm:$0xff]  }
 0x153   : > { %v852_v36 = vadd.f32 %v851_v35, %v4612_v1  ;;  %v853_v37 = vpop.f32.mrb[23].mxu0  ;;  %1201 = vmatmul.mubr.bf16.gmra.mrb[16].mxu1 %v916_v27  ;;  %v896_v40 = vmax.f32 %v848_v31, 0.0  ;;  %v3881_v27 = vld [vmem:[%s5447_s7 + $0xf0] ss:$8 sps:$4 sm:$0xff]  }
 0x154   : > { %v854_v38 = vadd.f32 %v853_v37, %v4615_v2  ;;  %1759 = vmatpush1.bf16.msra.mxu1 %v3846_v30  ;;  %v897_v43 = vmax.f32 %v850_v34, 0.0  ;;  %v956_v30 = vld [vmem:[%s5444_s4] sm:$0x3] }
 0x155   : > { %v898_v41 = vmax.f32 %v852_v36, 0.0  ;;  %1760 = vmatprep.subr.bf16.mxu1 %v3853_v33  ;;  %v4764_v31 = vrot.slane %v956_v30, %v4604_v62  ;;  %v4767_v32 = vrot.slane %v956_v30, %v4609_v0 }
 0x156   : > { %v899_v44 = vmax.f32 %v854_v38, 0.0 }
 0x157   : > { %v918_v45 = vpack.c.bf16 %v898_v41, %v896_v40 }
 0x158   : > { %v919_v46 = vpack.c.bf16 %v899_v44, %v897_v43  ;;  %v857_v47 = vpop.f32.mrb[24].mxu0  ;;  %1761 = vmatpush1.bf16.msra.mxu1 %v3851_v39 }
 0x159   : > { %v858_v49 = vadd.f32 %v857_v47, %v4612_v1  ;;  %v859_v50 = vpop.f32.mrb[25].mxu0  ;;  %1762 = vmatprep.subr.bf16.mxu1 %v3858_v42 }
 0x15a   : > { %v860_v52 = vadd.f32 %v859_v50, %v4615_v2  ;;  %v861_v53 = vpop.f32.mrb[26].mxu0  ;;  %1210 = vmatprep.mubr.bf16.mxu1 %v919_v46 }
 0x15b   : > { %v862_v54 = vadd.f32 %v861_v53, %v4612_v1  ;;  %v863_v55 = vpop.f32.mrb[27].mxu0  ;;  %1211 = vmatmul.mubr.bf16.gmra.mrb[20].mxu1 %v918_v45  ;;  %v900_v58 = vmax.f32 %v858_v49, 0.0 }
 0x15c   : > { %v864_v56 = vadd.f32 %v863_v55, %v4615_v2  ;;  %1763 = vmatpush1.bf16.msra.mxu1 %v3856_v48  ;;  %v901_v61 = vmax.f32 %v860_v52, 0.0  ;;  %v3886_v48 = vld [vmem:[%s5449_s9] ss:$8 sps:$4 sm:$0xff]  }
 0x15d   : > { %v902_v59 = vmax.f32 %v862_v54, 0.0  ;;  %1764 = vmatprep.subr.bf16.mxu1 %v3863_v51  ;;  %v3891_v51 = vld [vmem:[%s5449_s9 + $0x14] ss:$8 sps:$4 sm:$0xff]  }
 0x15e   : > { %v903_v63 = vmax.f32 %v864_v56, 0.0 }
 0x15f   : > { %v920_v3 = vpack.c.bf16 %v902_v59, %v900_v58 }
 0x160   : > { %v921_v4 = vpack.c.bf16 %v903_v63, %v901_v61  ;;  %v867_v5 = vpop.f32.mrb[28].mxu0  ;;  %1765 = vmatpush1.bf16.msra.mxu1 %v3861_v57  ;;  %v3889_v57 = vld [vmem:[%s5449_s9 + $0x10] ss:$8 sps:$4 sm:$0xff]  }
 0x161   : > { %v868_v7 = vadd.f32 %v867_v5, %v4612_v1  ;;  %v869_v8 = vpop.f32.mrb[29].mxu0  ;;  %1766 = vmatprep.subr.bf16.mxu1 %v3868_v60  ;;  %v3894_v60 = vld [vmem:[%s5449_s9 + $0x24] ss:$8 sps:$4 sm:$0xff]  }
 0x162   : > { %v870_v10 = vadd.f32 %v869_v8, %v4615_v2  ;;  %v871_v11 = vpop.f32.mrb[30].mxu0  ;;  %1220 = vmatprep.mubr.bf16.mxu1 %v921_v4 }
 0x163   : > { %v872_v12 = vadd.f32 %v871_v11, %v4612_v1  ;;  %v873_v13 = vpop.f32.mrb[31].mxu0  ;;  %1221 = vmatmul.mubr.bf16.gmra.mrb[24].mxu1 %v920_v3  ;;  %v904_v16 = vmax.f32 %v868_v7, 0.0  ;;  %v3875_v1 = vld [vmem:[%s5445_s5 + $0x28] sm:$0xff]  }
 0x164   : > { %v874_v14 = vadd.f32 %v873_v13, %v4615_v2  ;;  %1767 = vmatpush1.bf16.msra.mxu1 %v3866_v6  ;;  %v905_v18 = vmax.f32 %v870_v10, 0.0  ;;  %3521 = vmatpush3.bf16.msra.mxu0 %v3875_v1  ;;  %v3878_v2 = vld [vmem:[%s5447_s7 + $0xe4] ss:$8 sps:$4 sm:$0xff]   ;;  %v3892_v6 = vld [vmem:[%s5449_s9 + $0x20] ss:$8 sps:$4 sm:$0xff]  }
 0x165   : > { %v906_v17 = vmax.f32 %v872_v12, 0.0  ;;  %1768 = vmatprep.subr.bf16.mxu1 %v3873_v9  ;;  %3522 = vmatprep.subr.bf16.mxu0 %v3879_v22  ;;  %v3897_v9 = vld [vmem:[%s5449_s9 + $0x34] ss:$8 sps:$4 sm:$0xff]   ;;  %v3898_v22 = vld [vmem:[%s5449_s9 + $0x40] ss:$8 sps:$4 sm:$0xff]  }
 0x166   : > { %v907_v19 = vmax.f32 %v874_v14, 0.0 }
 0x167   : > { %v922_v20 = vpack.c.bf16 %v906_v17, %v904_v16 }
 0x168   : > { %v923_v21 = vpack.c.bf16 %v907_v19, %v905_v18  ;;  %1769 = vmatpush1.bf16.msra.mxu1 %v3871_v15  ;;  %3523 = vmatpush3.bf16.msra.mxu0 %v3880_v24  ;;  %v3895_v15 = vld [vmem:[%s5449_s9 + $0x30] ss:$8 sps:$4 sm:$0xff]   ;;  %v3900_v18 = vld [vmem:[%s5449_s9 + $0x44] ss:$8 sps:$4 sm:$0xff]  }
 0x169   : > { %1770 = vmatprep.subr.bf16.mxu1 %v3878_v2  ;;  %3524 = vmatprep.subr.bf16.mxu0 %v3884_v26 }
 0x16a   : > { %1230 = vmatprep.mubr.bf16.mxu1 %v923_v21 }
 0x16b   : > { %1231 = vmatmul.mubr.bf16.gmra.mrb[28].mxu1 %v922_v20 }
 0x16c   : > { %1771 = vmatpush1.bf16.msra.mxu1 %v3876_v23  ;;  %3525 = vmatpush3.bf16.msra.mxu0 %v3885_v28 }
 0x16d   : > { %1772 = vmatprep.subr.bf16.mxu1 %v3883_v25  ;;  %2107 = vmatprep.subr.bf16.mxu0 %v3888_v29  ;;  %v3903_v25 = vld [vmem:[%s5449_s9 + $0x54] ss:$8 sps:$4 sm:$0xff]  }
 0x170   : > { %1773 = vmatpush1.bf16.msra.mxu1 %v3881_v27 }
 0x206   : > { %v1162_v33 = vpop.f32.mrb[0].mxu1 }
 0x207   : > { %v1163_v34 = vadd.f32 %v1162_v33, %v4764_v31  ;;  %v1164_v35 = vpop.f32.mrb[1].mxu1  ;;  %v3901_v33 = vld [vmem:[%s5449_s9 + $0x50] ss:$8 sps:$4 sm:$0xff]  }
 0x208   : > { %v1165_v36 = vadd.f32 %v1164_v35, %v4767_v32  ;;  %v1166_v37 = vpop.f32.mrb[2].mxu1 }
 0x209   : > { %v1167_v38 = vadd.f32 %v1166_v37, %v4764_v31  ;;  %v1168_v39 = vpop.f32.mrb[3].mxu1  ;;  %v1241_v41 = vmax.f32 %v1163_v34, 0.0 }
 0x20a   : > { %v1169_v40 = vadd.f32 %v1168_v39, %v4767_v32  ;;  %v1242_v43 = vmax.f32 %v1165_v36, 0.0  ;;  %v3906_v36 = vld [vmem:[%s5449_s9 + $0x64] ss:$8 sps:$4 sm:$0xff]  }
 0x20b   : > { %v1243_v42 = vmax.f32 %v1167_v38, 0.0 }
 0x20c   : > { %v1244_v44 = vmax.f32 %v1169_v40, 0.0 }
 0x20d   : > { %v1273_v45 = vpack.c.bf16 %v1243_v42, %v1241_v41  ;;  %v3904_v42 = vld [vmem:[%s5449_s9 + $0x60] ss:$8 sps:$4 sm:$0xff]  }
 0x20e   : > { %v1274_v46 = vpack.c.bf16 %v1244_v44, %v1242_v43  ;;  %v1172_v47 = vpop.f32.mrb[4].mxu1 }
 0x20f   : > { %v1173_v49 = vadd.f32 %v1172_v47, %v4764_v31  ;;  %v1174_v50 = vpop.f32.mrb[5].mxu1 }
 0x210   : > { %v1175_v52 = vadd.f32 %v1174_v50, %v4767_v32  ;;  %v1176_v53 = vpop.f32.mrb[6].mxu1  ;;  %1456 = vmatprep.mubr.bf16.mxu0 %v1274_v46  ;;  %1774 = vmatprep.mubr.bf16.mxu1 %v1274_v46 }
 0x211   : > { %v1177_v54 = vadd.f32 %v1176_v53, %v4764_v31  ;;  %v1178_v55 = vpop.f32.mrb[7].mxu1  ;;  %1457 = vmatmul.mubr.bf16.vlgmr.msra.gmra.mrb[32].mxu0 %v1273_v45  ;;  %1775 = vmatmul.mubr.bf16.vlgmr.msra.gmra.mrb[32].mxu1 %v1273_v45  ;;  %v1245_v58 = vmax.f32 %v1173_v49, 0.0  ;;  %v3909_v45 = vld [vmem:[%s5449_s9 + $0x74] ss:$8 sps:$4 sm:$0xff]  }
 0x212   : > { %v1179_v56 = vadd.f32 %v1178_v55, %v4767_v32  ;;  %2108 = vmatpush1.bf16.msra.mxu0 %v3886_v48  ;;  %v1246_v61 = vmax.f32 %v1175_v52, 0.0 }
 0x213   : > { %v1247_v59 = vmax.f32 %v1177_v54, 0.0  ;;  %2109 = vmatprep.subr.bf16.mxu0 %v3891_v51  ;;  %v3907_v51 = vld [vmem:[%s5449_s9 + $0x70] ss:$8 sps:$4 sm:$0xff]   ;;  %v3912_v54 = vld [vmem:[%s5449_s9 + $0x84] ss:$8 sps:$4 sm:$0xff]  }
 0x214   : > { %v1248_v63 = vmax.f32 %v1179_v56, 0.0 }
 0x215   : > { %v1275_v3 = vpack.c.bf16 %v1247_v59, %v1245_v58 }
 0x216   : > { %v1276_v4 = vpack.c.bf16 %v1248_v63, %v1246_v61  ;;  %v1182_v5 = vpop.f32.mrb[8].mxu1  ;;  %2110 = vmatpush1.bf16.msra.mxu0 %v3889_v57 }
 0x217   : > { %v1183_v7 = vadd.f32 %v1182_v5, %v4764_v31  ;;  %v1184_v8 = vpop.f32.mrb[9].mxu1  ;;  %2111 = vmatprep.subr.bf16.mxu0 %v3894_v60  ;;  %v3910_v60 = vld [vmem:[%s5449_s9 + $0x80] ss:$8 sps:$4 sm:$0xff]  }
 0x218   : > { %v1185_v10 = vadd.f32 %v1184_v8, %v4767_v32  ;;  %v1186_v11 = vpop.f32.mrb[10].mxu1  ;;  %1464 = vmatprep.mubr.bf16.mxu0 %v1276_v4  ;;  %1784 = vmatprep.mubr.bf16.mxu1 %v1276_v4 }
 0x219   : > { %v1187_v12 = vadd.f32 %v1186_v11, %v4764_v31  ;;  %v1188_v13 = vpop.f32.mrb[11].mxu1  ;;  %1465 = vmatmul.mubr.bf16.gmra.mrb[36].mxu0 %v1275_v3  ;;  %1785 = vmatmul.mubr.bf16.gmra.mrb[36].mxu1 %v1275_v3  ;;  %v1249_v16 = vmax.f32 %v1183_v7, 0.0  ;;  %v3915_v3 = vld [vmem:[%s5449_s9 + $0x94] ss:$8 sps:$4 sm:$0xff]  }
 0x21a   : > { %v1189_v14 = vadd.f32 %v1188_v13, %v4767_v32  ;;  %2112 = vmatpush1.bf16.msra.mxu0 %v3892_v6  ;;  %v1250_v19 = vmax.f32 %v1185_v10, 0.0 }
 0x21b   : > { %v1251_v17 = vmax.f32 %v1187_v12, 0.0  ;;  %2113 = vmatprep.subr.bf16.mxu0 %v3897_v9  ;;  %v3913_v9 = vld [vmem:[%s5449_s9 + $0x90] ss:$8 sps:$4 sm:$0xff]   ;;  %v3918_v12 = vld [vmem:[%s5449_s9 + $0xa4] ss:$8 sps:$4 sm:$0xff]  }
 0x21c   : > { %v1252_v20 = vmax.f32 %v1189_v14, 0.0 }
 0x21d   : > { %v1277_v21 = vpack.c.bf16 %v1251_v17, %v1249_v16 }
 0x21e   : > { %v1278_v1 = vpack.c.bf16 %v1252_v20, %v1250_v19  ;;  %v1192_v2 = vpop.f32.mrb[12].mxu1  ;;  %2114 = vmatpush1.bf16.msra.mxu0 %v3895_v15 }
 0x21f   : > { %v1193_v23 = vadd.f32 %v1192_v2, %v4764_v31  ;;  %v1194_v24 = vpop.f32.mrb[13].mxu1  ;;  %2115 = vmatprep.subr.bf16.mxu0 %v3900_v18  ;;  %v3916_v18 = vld [vmem:[%s5449_s9 + $0xa0] ss:$8 sps:$4 sm:$0xff]  }
 0x220   : > { %v1195_v26 = vadd.f32 %v1194_v24, %v4767_v32  ;;  %v1196_v27 = vpop.f32.mrb[14].mxu1  ;;  %1472 = vmatprep.mubr.bf16.mxu0 %v1278_v1  ;;  %1794 = vmatprep.mubr.bf16.mxu1 %v1278_v1 }
 0x221   : > { %v1197_v28 = vadd.f32 %v1196_v27, %v4764_v31  ;;  %v1198_v29 = vpop.f32.mrb[15].mxu1  ;;  %1473 = vmatmul.mubr.bf16.gmra.mrb[40].mxu0 %v1277_v21  ;;  %1795 = vmatmul.mubr.bf16.gmra.mrb[40].mxu1 %v1277_v21  ;;  %v1253_v34 = vmax.f32 %v1193_v23, 0.0  ;;  %v3921_v21 = vld [vmem:[%s5449_s9 + $0xb4] ss:$8 sps:$4 sm:$0xff]  }
 0x222   : > { %v1199_v30 = vadd.f32 %v1198_v29, %v4767_v32  ;;  %2116 = vmatpush1.bf16.msra.mxu0 %v3898_v22  ;;  %v1254_v37 = vmax.f32 %v1195_v26, 0.0 }
 0x223   : > { %v1255_v35 = vmax.f32 %v1197_v28, 0.0  ;;  %2117 = vmatprep.subr.bf16.mxu0 %v3903_v25  ;;  %v3919_v25 = vld [vmem:[%s5449_s9 + $0xb0] ss:$8 sps:$4 sm:$0xff]   ;;  %v3924_v28 = vld [vmem:[%s5449_s9 + $0xc4] ss:$8 sps:$4 sm:$0xff]  }
 0x224   : > { %v1256_v38 = vmax.f32 %v1199_v30, 0.0 }
 0x225   : > { %v1279_v39 = vpack.c.bf16 %v1255_v35, %v1253_v34 }
 0x226   : > { %v1280_v40 = vpack.c.bf16 %v1256_v38, %v1254_v37  ;;  %v1202_v41 = vpop.f32.mrb[16].mxu1  ;;  %2118 = vmatpush1.bf16.msra.mxu0 %v3901_v33 }
 0x227   : > { %v1203_v43 = vadd.f32 %v1202_v41, %v4764_v31  ;;  %v1204_v44 = vpop.f32.mrb[17].mxu1  ;;  %2119 = vmatprep.subr.bf16.mxu0 %v3906_v36  ;;  %v3922_v36 = vld [vmem:[%s5449_s9 + $0xc0] ss:$8 sps:$4 sm:$0xff]  }
 0x228   : > { %v1205_v46 = vadd.f32 %v1204_v44, %v4767_v32  ;;  %v1206_v47 = vpop.f32.mrb[18].mxu1  ;;  %1480 = vmatprep.mubr.bf16.mxu0 %v1280_v40  ;;  %1804 = vmatprep.mubr.bf16.mxu1 %v1280_v40 }
 0x229   : > { %v1207_v48 = vadd.f32 %v1206_v47, %v4764_v31  ;;  %v1208_v49 = vpop.f32.mrb[19].mxu1  ;;  %1481 = vmatmul.mubr.bf16.gmra.mrb[44].mxu0 %v1279_v39  ;;  %1805 = vmatmul.mubr.bf16.gmra.mrb[44].mxu1 %v1279_v39  ;;  %v1257_v52 = vmax.f32 %v1203_v43, 0.0  ;;  %v3927_v39 = vld [vmem:[%s5449_s9 + $0xd4] ss:$8 sps:$4 sm:$0xff]  }
 0x22a   : > { %v1209_v50 = vadd.f32 %v1208_v49, %v4767_v32  ;;  %2120 = vmatpush1.bf16.msra.mxu0 %v3904_v42  ;;  %v1258_v55 = vmax.f32 %v1205_v46, 0.0 }
 0x22b   : > { %v1259_v53 = vmax.f32 %v1207_v48, 0.0  ;;  %2121 = vmatprep.subr.bf16.mxu0 %v3909_v45  ;;  %v3925_v45 = vld [vmem:[%s5449_s9 + $0xd0] ss:$8 sps:$4 sm:$0xff]  }
 0x22c   : > { %v1260_v56 = vmax.f32 %v1209_v50, 0.0 }
 0x22d   : > { %v1281_v57 = vpack.c.bf16 %v1259_v53, %v1257_v52  ;;  %v3933_v52 = vld [vmem:[%s5449_s9 + $0xf4] ss:$8 sps:$4 sm:$0xff]   ;;  %v3931_v53 = vld [vmem:[%s5449_s9 + $0xf0] ss:$8 sps:$4 sm:$0xff]  }
 0x22e   : > { %v1282_v58 = vpack.c.bf16 %v1260_v56, %v1258_v55  ;;  %v1212_v59 = vpop.f32.mrb[20].mxu1  ;;  %2122 = vmatpush1.bf16.msra.mxu0 %v3907_v51  ;;  %v3936_v55 = vld [vmem:[%s5451_s11 + $0x4] ss:$8 sps:$4 sm:$0xff]   ;;  %v3939_v56 = vld [vmem:[%s5451_s11 + $0x14] ss:$8 sps:$4 sm:$0xff]  }
 0x22f   : > { %v1213_v61 = vadd.f32 %v1212_v59, %v4764_v31  ;;  %v1214_v63 = vpop.f32.mrb[21].mxu1  ;;  %2123 = vmatprep.subr.bf16.mxu0 %v3912_v54  ;;  %v3934_v54 = vld [vmem:[%s5451_s11] ss:$8 sps:$4 sm:$0xff]   ;;  %2472 = vmatprep.subr.bf16.mxu1 %v3936_v55 }
 0x230   : > { %v1215_v4 = vadd.f32 %v1214_v63, %v4767_v32  ;;  %v1216_v5 = vpop.f32.mrb[22].mxu1  ;;  %1488 = vmatprep.mubr.bf16.mxu0 %v1282_v58  ;;  %1814 = vmatprep.mubr.bf16.mxu1 %v1282_v58  ;;  %v3942_v58 = vld [vmem:[%s5451_s11 + $0x24] ss:$8 sps:$4 sm:$0xff]   ;;  %v3940_v59 = vld [vmem:[%s5451_s11 + $0x20] ss:$8 sps:$4 sm:$0xff]  }
 0x231   : > { %v1217_v6 = vadd.f32 %v1216_v5, %v4764_v31  ;;  %v1218_v7 = vpop.f32.mrb[23].mxu1  ;;  %1489 = vmatmul.mubr.bf16.gmra.mrb[48].mxu0 %v1281_v57  ;;  %1815 = vmatmul.mubr.bf16.gmra.mrb[48].mxu1 %v1281_v57  ;;  %v1261_v10 = vmax.f32 %v1213_v61, 0.0  ;;  %v3937_v57 = vld [vmem:[%s5451_s11 + $0x10] ss:$8 sps:$4 sm:$0xff]   ;;  %v3948_v63 = vld [vmem:[%s5451_s11 + $0x44] ss:$8 sps:$4 sm:$0xff]  }
 0x232   : > { %v1219_v8 = vadd.f32 %v1218_v7, %v4767_v32  ;;  %2124 = vmatpush1.bf16.msra.mxu0 %v3910_v60  ;;  %v1262_v13 = vmax.f32 %v1215_v4, 0.0  ;;  %2473 = vmatpush1.bf16.msra.mxu1 %v3934_v54  ;;  %v3945_v60 = vld [vmem:[%s5451_s11 + $0x34] ss:$8 sps:$4 sm:$0xff]   ;;  %v3943_v61 = vld [vmem:[%s5451_s11 + $0x30] ss:$8 sps:$4 sm:$0xff]  }
 0x233   : > { %v1263_v11 = vmax.f32 %v1217_v6, 0.0  ;;  %2125 = vmatprep.subr.bf16.mxu0 %v3915_v3  ;;  %2474 = vmatprep.subr.bf16.mxu1 %v3939_v56  ;;  %v3946_v3 = vld [vmem:[%s5451_s11 + $0x40] ss:$8 sps:$4 sm:$0xff]   ;;  %v3951_v4 = vld [vmem:[%s5451_s11 + $0x54] ss:$8 sps:$4 sm:$0xff]  }
 0x234   : > { %v1264_v14 = vmax.f32 %v1219_v8, 0.0  ;;  %v3949_v5 = vld [vmem:[%s5451_s11 + $0x50] ss:$8 sps:$4 sm:$0xff]   ;;  %v3954_v6 = vld [vmem:[%s5451_s11 + $0x64] ss:$8 sps:$4 sm:$0xff]  }
 0x235   : > { %v1283_v15 = vpack.c.bf16 %v1263_v11, %v1261_v10  ;;  %v3952_v7 = vld [vmem:[%s5451_s11 + $0x60] ss:$8 sps:$4 sm:$0xff]   ;;  %v3957_v8 = vld [vmem:[%s5451_s11 + $0x74] ss:$8 sps:$4 sm:$0xff]   ;;  %v3960_v10 = vld [vmem:[%s5451_s11 + $0x84] ss:$8 sps:$4 sm:$0xff]  }
 0x236   : > { %v1284_v16 = vpack.c.bf16 %v1264_v14, %v1262_v13  ;;  %v1222_v17 = vpop.f32.mrb[24].mxu1  ;;  %2126 = vmatpush1.bf16.msra.mxu0 %v3913_v9  ;;  %2475 = vmatpush1.bf16.msra.mxu1 %v3937_v57  ;;  %v3955_v9 = vld [vmem:[%s5451_s11 + $0x70] ss:$8 sps:$4 sm:$0xff]   ;;  %v3958_v11 = vld [vmem:[%s5451_s11 + $0x80] ss:$8 sps:$4 sm:$0xff]  }
 0x237   : > { %v1223_v19 = vadd.f32 %v1222_v17, %v4764_v31  ;;  %v1224_v20 = vpop.f32.mrb[25].mxu1  ;;  %2127 = vmatprep.subr.bf16.mxu0 %v3918_v12  ;;  %2476 = vmatprep.subr.bf16.mxu1 %v3942_v58  ;;  %v3963_v12 = vld [vmem:[%s5451_s11 + $0x94] ss:$8 sps:$4 sm:$0xff]   ;;  %v3961_v13 = vld [vmem:[%s5451_s11 + $0x90] ss:$8 sps:$4 sm:$0xff]  }
 0x238   : > { %v1225_v1 = vadd.f32 %v1224_v20, %v4767_v32  ;;  %v1226_v2 = vpop.f32.mrb[26].mxu1  ;;  %1496 = vmatprep.mubr.bf16.mxu0 %v1284_v16  ;;  %1824 = vmatprep.mubr.bf16.mxu1 %v1284_v16  ;;  %v3966_v14 = vld [vmem:[%s5451_s11 + $0xa4] ss:$8 sps:$4 sm:$0xff]   ;;  %v3969_v16 = vld [vmem:[%s5451_s11 + $0xb4] ss:$8 sps:$4 sm:$0xff]  }
 0x239   : > { %v1227_v22 = vadd.f32 %v1226_v2, %v4764_v31  ;;  %v1228_v23 = vpop.f32.mrb[27].mxu1  ;;  %1497 = vmatmul.mubr.bf16.gmra.mrb[52].mxu0 %v1283_v15  ;;  %1825 = vmatmul.mubr.bf16.gmra.mrb[52].mxu1 %v1283_v15  ;;  %v1265_v26 = vmax.f32 %v1223_v19, 0.0  ;;  %v3964_v15 = vld [vmem:[%s5451_s11 + $0xa0] ss:$8 sps:$4 sm:$0xff]   ;;  %v3967_v17 = vld [vmem:[%s5451_s11 + $0xb0] ss:$8 sps:$4 sm:$0xff]  }
 0x23a   : > { %v1229_v24 = vadd.f32 %v1228_v23, %v4767_v32  ;;  %2128 = vmatpush1.bf16.msra.mxu0 %v3916_v18  ;;  %v1266_v29 = vmax.f32 %v1225_v1, 0.0  ;;  %2477 = vmatpush1.bf16.msra.mxu1 %v3940_v59  ;;  %v3972_v18 = vld [vmem:[%s5451_s11 + $0xc4] ss:$8 sps:$4 sm:$0xff]   ;;  %v3970_v19 = vld [vmem:[%s5451_s11 + $0xc0] ss:$8 sps:$4 sm:$0xff]  }
 0x23b   : > { %v1267_v27 = vmax.f32 %v1227_v22, 0.0  ;;  %2129 = vmatprep.subr.bf16.mxu0 %v3921_v21  ;;  %2478 = vmatprep.subr.bf16.mxu1 %v3945_v60  ;;  %v3975_v20 = vld [vmem:[%s5451_s11 + $0xd4] ss:$8 sps:$4 sm:$0xff]   ;;  %v3973_v21 = vld [vmem:[%s5451_s11 + $0xd0] ss:$8 sps:$4 sm:$0xff]  }
 0x23c   : > { %v1268_v30 = vmax.f32 %v1229_v24, 0.0  ;;  %v1570_v1 = vld [vmem:[%s5448_s8] sm:$0x3] }
 0x23d   : > { %v1285_v33 = vpack.c.bf16 %v1267_v27, %v1265_v26  ;;  %v4982_v2 = vrot.slane %v1570_v1, %v4604_v62  ;;  %v4986_v22 = vrot.slane %v1570_v1, %v4609_v0  ;;  %v4994_v26 = vld [vmem:[%s5446_s6] ss:$0 sm:$0xff] }
 0x23e   : > { %v1286_v34 = vpack.c.bf16 %v1268_v30, %v1266_v29  ;;  %v1232_v35 = vpop.f32.mrb[28].mxu1  ;;  %2130 = vmatpush1.bf16.msra.mxu0 %v3919_v25  ;;  %2479 = vmatpush1.bf16.msra.mxu1 %v3943_v61 }
 0x23f   : > { %v1233_v37 = vadd.f32 %v1232_v35, %v4764_v31  ;;  %v1234_v38 = vpop.f32.mrb[29].mxu1  ;;  %2131 = vmatprep.subr.bf16.mxu0 %v3924_v28  ;;  %2480 = vmatprep.subr.bf16.mxu1 %v3948_v63 }
 0x240   : > { %v1235_v40 = vadd.f32 %v1234_v38, %v4767_v32  ;;  %v1236_v41 = vpop.f32.mrb[30].mxu1  ;;  %1504 = vmatprep.mubr.bf16.mxu0 %v1286_v34  ;;  %1834 = vmatprep.mubr.bf16.mxu1 %v1286_v34 }
 0x241   : > { %v1237_v42 = vadd.f32 %v1236_v41, %v4764_v31  ;;  %v1238_v43 = vpop.f32.mrb[31].mxu1  ;;  %1505 = vmatmul.mubr.bf16.gmra.mrb[56].mxu0 %v1285_v33  ;;  %1835 = vmatmul.mubr.bf16.gmra.mrb[56].mxu1 %v1285_v33  ;;  %v1269_v46 = vmax.f32 %v1233_v37, 0.0  ;;  %v3930_v31 = vld [vmem:[%s5449_s9 + $0xe4] ss:$8 sps:$4 sm:$0xff]  }
 0x242   : > { %v1239_v44 = vadd.f32 %v1238_v43, %v4767_v32  ;;  %2132 = vmatpush1.bf16.msra.mxu0 %v3922_v36  ;;  %v1270_v48 = vmax.f32 %v1235_v40, 0.0  ;;  %v3928_v32 = vld [vmem:[%s5449_s9 + $0xe0] ss:$8 sps:$4 sm:$0xff]   ;;  %2481 = vmatpush1.bf16.msra.mxu1 %v3946_v3 }
 0x243   : > { %v1271_v47 = vmax.f32 %v1237_v42, 0.0  ;;  %2133 = vmatprep.subr.bf16.mxu0 %v3927_v39  ;;  %2482 = vmatprep.subr.bf16.mxu1 %v3951_v4 }
 0x244   : > { %v1272_v49 = vmax.f32 %v1239_v44, 0.0 }
 0x245   : > { %v1287_v50 = vpack.c.bf16 %v1271_v47, %v1269_v46 }
 0x246   : > { %v1288_v51 = vpack.c.bf16 %v1272_v49, %v1270_v48  ;;  %2134 = vmatpush1.bf16.msra.mxu0 %v3925_v45  ;;  %2483 = vmatpush1.bf16.msra.mxu1 %v3949_v5 }
 0x247   : > { %2135 = vmatprep.subr.bf16.mxu0 %v3930_v31  ;;  %2484 = vmatprep.subr.bf16.mxu1 %v3954_v6 }
 0x248   : > { %1512 = vmatprep.mubr.bf16.mxu0 %v1288_v51  ;;  %1844 = vmatprep.mubr.bf16.mxu1 %v1288_v51 }
 0x249   : > { %1513 = vmatmul.mubr.bf16.gmra.mrb[60].mxu0 %v1287_v50  ;;  %1845 = vmatmul.mubr.bf16.gmra.mrb[60].mxu1 %v1287_v50 }
 0x24a   : > { %2136 = vmatpush1.bf16.msra.mxu0 %v3928_v32  ;;  %2485 = vmatpush1.bf16.msra.mxu1 %v3952_v7 }
 0x24b   : > { %2137 = vmatprep.subr.bf16.mxu0 %v3933_v52  ;;  %2486 = vmatprep.subr.bf16.mxu1 %v3957_v8 }
 0x24e   : > { %2138 = vmatpush1.bf16.msra.mxu0 %v3931_v53  ;;  %2487 = vmatpush1.bf16.msra.mxu1 %v3955_v9 }
 0x24f   : > { %2488 = vmatprep.subr.bf16.mxu1 %v3960_v10 }
 0x252   : > { %2489 = vmatpush1.bf16.msra.mxu1 %v3958_v11 }
 0x253   : > { %2490 = vmatprep.subr.bf16.mxu1 %v3963_v12 }
 0x256   : > { %2491 = vmatpush1.bf16.msra.mxu1 %v3961_v13 }
 0x257   : > { %2492 = vmatprep.subr.bf16.mxu1 %v3966_v14 }
 0x25a   : > { %2493 = vmatpush1.bf16.msra.mxu1 %v3964_v15 }
 0x25b   : > { %2494 = vmatprep.subr.bf16.mxu1 %v3969_v16 }
 0x25e   : > { %2495 = vmatpush1.bf16.msra.mxu1 %v3967_v17 }
 0x25f   : > { %2496 = vmatprep.subr.bf16.mxu1 %v3972_v18 }
 0x262   : > { %2497 = vmatpush1.bf16.msra.mxu1 %v3970_v19 }
 0x263   : > { %2498 = vmatprep.subr.bf16.mxu1 %v3975_v20 }
 0x266   : > { %2499 = vmatpush1.bf16.msra.mxu1 %v3973_v21 }
 0x2e4   : > { %v3526_v23 = vpop.f32.mrb[32].mxu0  ;;  %v1776_v24 = vpop.f32.mrb[32].mxu1 }
 0x2e5   : > { %v1777_v25 = vadd.f32 %v1776_v24, %v4982_v2  ;;  %v3527_v27 = vpop.f32.mrb[33].mxu0  ;;  %v1778_v28 = vpop.f32.mrb[33].mxu1 }
 0x2e6   : > { %v3528_v29 = vadd.f32 %v3527_v27, %v3526_v23  ;;  %v1779_v30 = vadd.f32 %v1778_v28, %v4986_v22  ;;  %v3529_v33 = vpop.f32.mrb[34].mxu0  ;;  %v1780_v34 = vpop.f32.mrb[34].mxu1 }
 0x2e7   : > { %v1781_v35 = vadd.f32 %v1780_v34, %v4982_v2  ;;  %v3530_v36 = vpop.f32.mrb[35].mxu0  ;;  %v1782_v37 = vpop.f32.mrb[35].mxu1  ;;  %v1855_v41 = vmax.f32 %v1777_v25, 0.0 }
 0x2e8   : > { %v1459_v38 = vadd.f32 %v3528_v29, %v4994_v26  ;;  %v3531_v39 = vadd.f32 %v3530_v36, %v3529_v33  ;;  %v1783_v40 = vadd.f32 %v1782_v37, %v4986_v22  ;;  %v1856_v43 = vmax.f32 %v1779_v30, 0.0 }
 0x2e9   : > { %v1857_v42 = vmax.f32 %v1781_v35, 0.0 }
 0x2ea   : > { %1522 = vst.msk [vmem:[%s5000_s19] sm:$0xff] %vm1521_vm0, %v1459_v38  ;;  %v1462_v44 = vadd.f32 %v3531_v39, %v4994_v26  ;;  %v1858_v45 = vmax.f32 %v1783_v40, 0.0 }
 0x2eb   : > { %v1887_v46 = vpack.c.bf16 %v1857_v42, %v1855_v41 }
 0x2ec   : > { %1523 = vst.msk [vmem:[%s5000_s19 + $0x8] sm:$0xff] %vm1521_vm0, %v1462_v44  ;;  %v1888_v47 = vpack.c.bf16 %v1858_v45, %v1856_v43  ;;  %v3532_v48 = vpop.f32.mrb[36].mxu0  ;;  %v1786_v49 = vpop.f32.mrb[36].mxu1 }
 0x2ed   : > { %v1787_v50 = vadd.f32 %v1786_v49, %v4982_v2  ;;  %v3533_v51 = vpop.f32.mrb[37].mxu0  ;;  %v1788_v31 = vpop.f32.mrb[37].mxu1 }
 0x2ee   : > { %v3534_v32 = vadd.f32 %v3533_v51, %v3532_v48  ;;  %v1789_v52 = vadd.f32 %v1788_v31, %v4986_v22  ;;  %v3535_v53 = vpop.f32.mrb[38].mxu0  ;;  %v1790_v54 = vpop.f32.mrb[38].mxu1  ;;  %2139 = vmatprep.mubr.bf16.mxu0 %v1888_v47 }
 0x2ef   : > { %v1791_v55 = vadd.f32 %v1790_v54, %v4982_v2  ;;  %v3536_v56 = vpop.f32.mrb[39].mxu0  ;;  %v1792_v57 = vpop.f32.mrb[39].mxu1  ;;  %2140 = vmatmul.mubr.bf16.vlgmr.msra.gmra.mrb[64].mxu0 %v1887_v46  ;;  %v1859_v61 = vmax.f32 %v1787_v50, 0.0 }
 0x2f0   : > { %v1467_v58 = vadd.f32 %v3534_v32, %v4994_v26  ;;  %v3537_v59 = vadd.f32 %v3536_v56, %v3535_v53  ;;  %v1793_v60 = vadd.f32 %v1792_v57, %v4986_v22  ;;  %v1860_v3 = vmax.f32 %v1789_v52, 0.0 }
 0x2f1   : > { %v1861_v63 = vmax.f32 %v1791_v55, 0.0 }
 0x2f2   : > { %1524 = vst.msk [vmem:[%s5000_s19 + $0x10] sm:$0xff] %vm1521_vm0, %v1467_v58  ;;  %v1470_v4 = vadd.f32 %v3537_v59, %v4994_v26  ;;  %v1862_v5 = vmax.f32 %v1793_v60, 0.0 }
 0x2f3   : > { %v1889_v6 = vpack.c.bf16 %v1861_v63, %v1859_v61 }
 0x2f4   : > { %1525 = vst.msk [vmem:[%s5000_s19 + $0x18] sm:$0xff] %vm1521_vm0, %v1470_v4  ;;  %v1890_v7 = vpack.c.bf16 %v1862_v5, %v1860_v3  ;;  %v3538_v8 = vpop.f32.mrb[40].mxu0  ;;  %v1796_v9 = vpop.f32.mrb[40].mxu1 }
 0x2f5   : > { %v1797_v10 = vadd.f32 %v1796_v9, %v4982_v2  ;;  %v3539_v11 = vpop.f32.mrb[41].mxu0  ;;  %v1798_v12 = vpop.f32.mrb[41].mxu1 }
 0x2f6   : > { %v3540_v13 = vadd.f32 %v3539_v11, %v3538_v8  ;;  %v1799_v14 = vadd.f32 %v1798_v12, %v4986_v22  ;;  %v3541_v15 = vpop.f32.mrb[42].mxu0  ;;  %v1800_v16 = vpop.f32.mrb[42].mxu1  ;;  %2149 = vmatprep.mubr.bf16.mxu0 %v1890_v7 }
 0x2f7   : > { %v1801_v17 = vadd.f32 %v1800_v16, %v4982_v2  ;;  %v3542_v18 = vpop.f32.mrb[43].mxu0  ;;  %v1802_v19 = vpop.f32.mrb[43].mxu1  ;;  %2150 = vmatmul.mubr.bf16.gmra.mrb[68].mxu0 %v1889_v6  ;;  %v1863_v23 = vmax.f32 %v1797_v10, 0.0 }
 0x2f8   : > { %v1475_v20 = vadd.f32 %v3540_v13, %v4994_v26  ;;  %v3543_v21 = vadd.f32 %v3542_v18, %v3541_v15  ;;  %v1803_v1 = vadd.f32 %v1802_v19, %v4986_v22  ;;  %v1864_v25 = vmax.f32 %v1799_v14, 0.0 }
 0x2f9   : > { %v1865_v24 = vmax.f32 %v1801_v17, 0.0 }
 0x2fa   : > { %1526 = vst.msk [vmem:[%s5000_s19 + $0x20] sm:$0xff] %vm1521_vm0, %v1475_v20  ;;  %v1478_v27 = vadd.f32 %v3543_v21, %v4994_v26  ;;  %v1866_v28 = vmax.f32 %v1803_v1, 0.0 }
 0x2fb   : > { %v1891_v29 = vpack.c.bf16 %v1865_v24, %v1863_v23 }
 0x2fc   : > { %1527 = vst.msk [vmem:[%s5000_s19 + $0x28] sm:$0xff] %vm1521_vm0, %v1478_v27  ;;  %v1892_v30 = vpack.c.bf16 %v1866_v28, %v1864_v25  ;;  %v3544_v33 = vpop.f32.mrb[44].mxu0  ;;  %v1806_v34 = vpop.f32.mrb[44].mxu1 }
 0x2fd   : > { %v1807_v35 = vadd.f32 %v1806_v34, %v4982_v2  ;;  %v3545_v36 = vpop.f32.mrb[45].mxu0  ;;  %v1808_v37 = vpop.f32.mrb[45].mxu1 }
 0x2fe   : > { %v3546_v38 = vadd.f32 %v3545_v36, %v3544_v33  ;;  %v1809_v39 = vadd.f32 %v1808_v37, %v4986_v22  ;;  %v3547_v40 = vpop.f32.mrb[46].mxu0  ;;  %v1810_v41 = vpop.f32.mrb[46].mxu1  ;;  %2159 = vmatprep.mubr.bf16.mxu0 %v1892_v30 }
 0x2ff   : > { %v1811_v42 = vadd.f32 %v1810_v41, %v4982_v2  ;;  %v3548_v43 = vpop.f32.mrb[47].mxu0  ;;  %v1812_v44 = vpop.f32.mrb[47].mxu1  ;;  %2160 = vmatmul.mubr.bf16.gmra.mrb[72].mxu0 %v1891_v29  ;;  %v1867_v48 = vmax.f32 %v1807_v35, 0.0 }
 0x300   : > { %v1483_v45 = vadd.f32 %v3546_v38, %v4994_v26  ;;  %v3549_v46 = vadd.f32 %v3548_v43, %v3547_v40  ;;  %v1813_v47 = vadd.f32 %v1812_v44, %v4986_v22  ;;  %v1868_v50 = vmax.f32 %v1809_v39, 0.0 }
 0x301   : > { %v1869_v49 = vmax.f32 %v1811_v42, 0.0 }
 0x302   : > { %1528 = vst.msk [vmem:[%s5000_s19 + $0x30] sm:$0xff] %vm1521_vm0, %v1483_v45  ;;  %v1486_v51 = vadd.f32 %v3549_v46, %v4994_v26  ;;  %v1870_v31 = vmax.f32 %v1813_v47, 0.0 }
 0x303   : > { %v1893_v32 = vpack.c.bf16 %v1869_v49, %v1867_v48 }
 0x304   : > { %1529 = vst.msk [vmem:[%s5000_s19 + $0x38] sm:$0xff] %vm1521_vm0, %v1486_v51  ;;  %v1894_v52 = vpack.c.bf16 %v1870_v31, %v1868_v50  ;;  %v3550_v53 = vpop.f32.mrb[48].mxu0  ;;  %v1816_v54 = vpop.f32.mrb[48].mxu1 }
 0x305   : > { %v1817_v55 = vadd.f32 %v1816_v54, %v4982_v2  ;;  %v3551_v56 = vpop.f32.mrb[49].mxu0  ;;  %v1818_v57 = vpop.f32.mrb[49].mxu1 }
 0x306   : > { %v3552_v58 = vadd.f32 %v3551_v56, %v3550_v53  ;;  %v1819_v59 = vadd.f32 %v1818_v57, %v4986_v22  ;;  %v3553_v60 = vpop.f32.mrb[50].mxu0  ;;  %v1820_v61 = vpop.f32.mrb[50].mxu1  ;;  %2169 = vmatprep.mubr.bf16.mxu0 %v1894_v52 }
 0x307   : > { %v1821_v63 = vadd.f32 %v1820_v61, %v4982_v2  ;;  %v3554_v3 = vpop.f32.mrb[51].mxu0  ;;  %v1822_v4 = vpop.f32.mrb[51].mxu1  ;;  %2170 = vmatmul.mubr.bf16.gmra.mrb[76].mxu0 %v1893_v32  ;;  %v1871_v8 = vmax.f32 %v1817_v55, 0.0 }
 0x308   : > { %v1491_v5 = vadd.f32 %v3552_v58, %v4994_v26  ;;  %v3555_v6 = vadd.f32 %v3554_v3, %v3553_v60  ;;  %v1823_v7 = vadd.f32 %v1822_v4, %v4986_v22  ;;  %v1872_v10 = vmax.f32 %v1819_v59, 0.0 }
 0x309   : > { %v1873_v9 = vmax.f32 %v1821_v63, 0.0 }
 0x30a   : > { %1530 = vst.msk [vmem:[%s5000_s19 + $0x40] sm:$0xff] %vm1521_vm0, %v1491_v5  ;;  %v1494_v11 = vadd.f32 %v3555_v6, %v4994_v26  ;;  %v1874_v12 = vmax.f32 %v1823_v7, 0.0 }
 0x30b   : > { %v1895_v13 = vpack.c.bf16 %v1873_v9, %v1871_v8 }
 0x30c   : > { %1531 = vst.msk [vmem:[%s5000_s19 + $0x48] sm:$0xff] %vm1521_vm0, %v1494_v11  ;;  %v1896_v14 = vpack.c.bf16 %v1874_v12, %v1872_v10  ;;  %v3556_v15 = vpop.f32.mrb[52].mxu0  ;;  %v1826_v16 = vpop.f32.mrb[52].mxu1 }
 0x30d   : > { %v1827_v17 = vadd.f32 %v1826_v16, %v4982_v2  ;;  %v3557_v18 = vpop.f32.mrb[53].mxu0  ;;  %v1828_v19 = vpop.f32.mrb[53].mxu1 }
 0x30e   : > { %v3558_v20 = vadd.f32 %v3557_v18, %v3556_v15  ;;  %v1829_v21 = vadd.f32 %v1828_v19, %v4986_v22  ;;  %v3559_v1 = vpop.f32.mrb[54].mxu0  ;;  %v1830_v23 = vpop.f32.mrb[54].mxu1  ;;  %2179 = vmatprep.mubr.bf16.mxu0 %v1896_v14 }
 0x30f   : > { %v1831_v24 = vadd.f32 %v1830_v23, %v4982_v2  ;;  %v3560_v25 = vpop.f32.mrb[55].mxu0  ;;  %v1832_v27 = vpop.f32.mrb[55].mxu1  ;;  %2180 = vmatmul.mubr.bf16.gmra.mrb[80].mxu0 %v1895_v13  ;;  %v1875_v33 = vmax.f32 %v1827_v17, 0.0  ;;  %v1935_v23 = vld [vmem:[%s5450_s10] sm:$0x3] }
 0x310   : > { %v1499_v28 = vadd.f32 %v3558_v20, %v4994_v26  ;;  %v3561_v29 = vadd.f32 %v3560_v25, %v3559_v1  ;;  %v1833_v30 = vadd.f32 %v1832_v27, %v4986_v22  ;;  %v1876_v35 = vmax.f32 %v1829_v21, 0.0  ;;  %v3978_v21 = vld [vmem:[%s5451_s11 + $0xe4] ss:$8 sps:$4 sm:$0xff]   ;;  %v3979_v1 = vld [vmem:[%s5451_s11 + $0xf0] ss:$8 sps:$4 sm:$0xff]  }
 0x311   : > { %v1877_v34 = vmax.f32 %v1831_v24, 0.0  ;;  %2500 = vmatprep.subr.bf16.mxu1 %v3978_v21  ;;  %v5093_v24 = vrot.slane %v1935_v23, %v4604_v62  ;;  %v5096_v25 = vrot.slane %v1935_v23, %v4609_v0 }
 0x312   : > { %1532 = vst.msk [vmem:[%s5000_s19 + $0x50] sm:$0xff] %vm1521_vm0, %v1499_v28  ;;  %v1502_v36 = vadd.f32 %v3561_v29, %v4994_v26  ;;  %v1878_v37 = vmax.f32 %v1833_v30, 0.0 }
 0x313   : > { %v1897_v38 = vpack.c.bf16 %v1877_v34, %v1875_v33 }
 0x314   : > { %1533 = vst.msk [vmem:[%s5000_s19 + $0x58] sm:$0xff] %vm1521_vm0, %v1502_v36  ;;  %v1898_v39 = vpack.c.bf16 %v1878_v37, %v1876_v35  ;;  %v3562_v40 = vpop.f32.mrb[56].mxu0  ;;  %v1836_v41 = vpop.f32.mrb[56].mxu1 }
 0x315   : > { %v1837_v42 = vadd.f32 %v1836_v41, %v4982_v2  ;;  %v3563_v43 = vpop.f32.mrb[57].mxu0  ;;  %v1838_v44 = vpop.f32.mrb[57].mxu1 }
 0x316   : > { %v3564_v45 = vadd.f32 %v3563_v43, %v3562_v40  ;;  %v1839_v46 = vadd.f32 %v1838_v44, %v4986_v22  ;;  %v3565_v47 = vpop.f32.mrb[58].mxu0  ;;  %v1840_v48 = vpop.f32.mrb[58].mxu1  ;;  %2189 = vmatprep.mubr.bf16.mxu0 %v1898_v39 }
 0x317   : > { %v1841_v49 = vadd.f32 %v1840_v48, %v4982_v2  ;;  %v3566_v50 = vpop.f32.mrb[59].mxu0  ;;  %v1842_v51 = vpop.f32.mrb[59].mxu1  ;;  %2190 = vmatmul.mubr.bf16.gmra.mrb[84].mxu0 %v1897_v38  ;;  %v1879_v53 = vmax.f32 %v1837_v42, 0.0 }
 0x318   : > { %v1507_v31 = vadd.f32 %v3564_v45, %v4994_v26  ;;  %v3567_v32 = vadd.f32 %v3566_v50, %v3565_v47  ;;  %v1843_v52 = vadd.f32 %v1842_v51, %v4986_v22  ;;  %v1880_v55 = vmax.f32 %v1839_v46, 0.0 }
 0x319   : > { %v1881_v54 = vmax.f32 %v1841_v49, 0.0 }
 0x31a   : > { %1534 = vst.msk [vmem:[%s5000_s19 + $0x60] sm:$0xff] %vm1521_vm0, %v1507_v31  ;;  %v1510_v56 = vadd.f32 %v3567_v32, %v4994_v26  ;;  %v1882_v57 = vmax.f32 %v1843_v52, 0.0 }
 0x31b   : > { %v1899_v58 = vpack.c.bf16 %v1881_v54, %v1879_v53 }
 0x31c   : > { %1535 = vst.msk [vmem:[%s5000_s19 + $0x68] sm:$0xff] %vm1521_vm0, %v1510_v56  ;;  %v1900_v59 = vpack.c.bf16 %v1882_v57, %v1880_v55  ;;  %v3568_v60 = vpop.f32.mrb[60].mxu0  ;;  %v1846_v61 = vpop.f32.mrb[60].mxu1 }
 0x31d   : > { %v1847_v63 = vadd.f32 %v1846_v61, %v4982_v2  ;;  %v3569_v3 = vpop.f32.mrb[61].mxu0  ;;  %v1848_v4 = vpop.f32.mrb[61].mxu1 }
 0x31e   : > { %v3570_v5 = vadd.f32 %v3569_v3, %v3568_v60  ;;  %v1849_v6 = vadd.f32 %v1848_v4, %v4986_v22  ;;  %v3571_v7 = vpop.f32.mrb[62].mxu0  ;;  %v1850_v8 = vpop.f32.mrb[62].mxu1  ;;  %2199 = vmatprep.mubr.bf16.mxu0 %v1900_v59 }
 0x31f   : > { %v1851_v9 = vadd.f32 %v1850_v8, %v4982_v2  ;;  %v3572_v10 = vpop.f32.mrb[63].mxu0  ;;  %v1852_v11 = vpop.f32.mrb[63].mxu1  ;;  %2200 = vmatmul.mubr.bf16.gmra.mrb[88].mxu0 %v1899_v58  ;;  %v1883_v15 = vmax.f32 %v1847_v63, 0.0 }
 0x320   : > { %v1515_v12 = vadd.f32 %v3570_v5, %v4994_v26  ;;  %v3573_v13 = vadd.f32 %v3572_v10, %v3571_v7  ;;  %v1853_v14 = vadd.f32 %v1852_v11, %v4986_v22  ;;  %v1884_v17 = vmax.f32 %v1849_v6, 0.0  ;;  %v3976_v22 = vld [vmem:[%s5451_s11 + $0xe0] ss:$8 sps:$4 sm:$0xff]  }
 0x321   : > { %v1885_v16 = vmax.f32 %v1851_v9, 0.0  ;;  %2501 = vmatpush1.bf16.msra.mxu1 %v3976_v22 }
 0x322   : > { %1536 = vst.msk [vmem:[%s5000_s19 + $0x70] sm:$0xff] %vm1521_vm0, %v1515_v12  ;;  %v1518_v18 = vadd.f32 %v3573_v13, %v4994_v26  ;;  %v1886_v19 = vmax.f32 %v1853_v14, 0.0  ;;  %v3981_v26 = vld [vmem:[%s5451_s11 + $0xf4] ss:$8 sps:$4 sm:$0xff]  }
 0x323   : > { %v1901_v20 = vpack.c.bf16 %v1885_v16, %v1883_v15  ;;  %2502 = vmatprep.subr.bf16.mxu1 %v3981_v26 }
 0x324   : > { %1537 = vst.msk [vmem:[%s5000_s19 + $0x78] sm:$0xff] %vm1521_vm0, %v1518_v18  ;;  %v1902_v2 = vpack.c.bf16 %v1886_v19, %v1884_v17 }
 0x325   : > { %2503 = vmatpush1.bf16.msra.mxu1 %v3979_v1 }
 0x326   : > { %2209 = vmatprep.mubr.bf16.mxu0 %v1902_v2 }
 0x327   : > { %2210 = vmatmul.mubr.bf16.gmra.mrb[92].mxu0 %v1901_v20 }
 0x3c2   : > { %v2141_v27 = vpop.f32.mrb[64].mxu0 }
 0x3c3   : > { %v2142_v28 = vadd.f32 %v2141_v27, %v5093_v24  ;;  %v2143_v29 = vpop.f32.mrb[65].mxu0 }
 0x3c4   : > { %v2144_v30 = vadd.f32 %v2143_v29, %v5096_v25  ;;  %v2145_v33 = vpop.f32.mrb[66].mxu0 }
 0x3c5   : > { %v2146_v34 = vadd.f32 %v2145_v33, %v5093_v24  ;;  %v2147_v35 = vpop.f32.mrb[67].mxu0  ;;  %v2220_v37 = vmax.f32 %v2142_v28, 0.0 }
 0x3c6   : > { %v2148_v36 = vadd.f32 %v2147_v35, %v5096_v25  ;;  %v2221_v39 = vmax.f32 %v2144_v30, 0.0 }
 0x3c7   : > { %v2222_v38 = vmax.f32 %v2146_v34, 0.0 }
 0x3c8   : > { %v2223_v40 = vmax.f32 %v2148_v36, 0.0 }
 0x3c9   : > { %v2252_v41 = vpack.c.bf16 %v2222_v38, %v2220_v37 }
 0x3ca   : > { %v2253_v42 = vpack.c.bf16 %v2223_v40, %v2221_v39  ;;  %v2151_v43 = vpop.f32.mrb[68].mxu0 }
 0x3cb   : > { %v2152_v44 = vadd.f32 %v2151_v43, %v5093_v24  ;;  %v2153_v45 = vpop.f32.mrb[69].mxu0 }
 0x3cc   : > { %v2154_v46 = vadd.f32 %v2153_v45, %v5096_v25  ;;  %v2155_v47 = vpop.f32.mrb[70].mxu0  ;;  %2504 = vmatprep.mubr.bf16.mxu1 %v2253_v42 }
 0x3cd   : > { %v2156_v48 = vadd.f32 %v2155_v47, %v5093_v24  ;;  %v2157_v49 = vpop.f32.mrb[71].mxu0  ;;  %2505 = vmatmul.mubr.bf16.vlgmr.msra.gmra.mrb[64].mxu1 %v2252_v41  ;;  %v2224_v51 = vmax.f32 %v2152_v44, 0.0 }
 0x3ce   : > { %v2158_v50 = vadd.f32 %v2157_v49, %v5096_v25  ;;  %v2225_v32 = vmax.f32 %v2154_v46, 0.0 }
 0x3cf   : > { %v2226_v31 = vmax.f32 %v2156_v48, 0.0 }
 0x3d0   : > { %v2227_v52 = vmax.f32 %v2158_v50, 0.0 }
 0x3d1   : > { %v2254_v53 = vpack.c.bf16 %v2226_v31, %v2224_v51 }
 0x3d2   : > { %v2255_v54 = vpack.c.bf16 %v2227_v52, %v2225_v32  ;;  %v2161_v55 = vpop.f32.mrb[72].mxu0 }
 0x3d3   : > { %v2162_v56 = vadd.f32 %v2161_v55, %v5093_v24  ;;  %v2163_v57 = vpop.f32.mrb[73].mxu0 }
 0x3d4   : > { %v2164_v58 = vadd.f32 %v2163_v57, %v5096_v25  ;;  %v2165_v59 = vpop.f32.mrb[74].mxu0  ;;  %2514 = vmatprep.mubr.bf16.mxu1 %v2255_v54 }
 0x3d5   : > { %v2166_v60 = vadd.f32 %v2165_v59, %v5093_v24  ;;  %v2167_v61 = vpop.f32.mrb[75].mxu0  ;;  %2515 = vmatmul.mubr.bf16.gmra.mrb[68].mxu1 %v2254_v53  ;;  %v2228_v3 = vmax.f32 %v2162_v56, 0.0 }
 0x3d6   : > { %v2168_v63 = vadd.f32 %v2167_v61, %v5096_v25  ;;  %v2229_v5 = vmax.f32 %v2164_v58, 0.0 }
 0x3d7   : > { %v2230_v4 = vmax.f32 %v2166_v60, 0.0 }
 0x3d8   : > { %v2231_v6 = vmax.f32 %v2168_v63, 0.0 }
 0x3d9   : > { %v2256_v7 = vpack.c.bf16 %v2230_v4, %v2228_v3 }
 0x3da   : > { %v2257_v8 = vpack.c.bf16 %v2231_v6, %v2229_v5  ;;  %v2171_v9 = vpop.f32.mrb[76].mxu0 }
 0x3db   : > { %v2172_v10 = vadd.f32 %v2171_v9, %v5093_v24  ;;  %v2173_v11 = vpop.f32.mrb[77].mxu0 }
 0x3dc   : > { %v2174_v12 = vadd.f32 %v2173_v11, %v5096_v25  ;;  %v2175_v13 = vpop.f32.mrb[78].mxu0  ;;  %2524 = vmatprep.mubr.bf16.mxu1 %v2257_v8 }
 0x3dd   : > { %v2176_v14 = vadd.f32 %v2175_v13, %v5093_v24  ;;  %v2177_v15 = vpop.f32.mrb[79].mxu0  ;;  %2525 = vmatmul.mubr.bf16.gmra.mrb[72].mxu1 %v2256_v7  ;;  %v2232_v17 = vmax.f32 %v2172_v10, 0.0 }
 0x3de   : > { %v2178_v16 = vadd.f32 %v2177_v15, %v5096_v25  ;;  %v2233_v19 = vmax.f32 %v2174_v12, 0.0 }
 0x3df   : > { %v2234_v18 = vmax.f32 %v2176_v14, 0.0 }
 0x3e0   : > { %v2235_v20 = vmax.f32 %v2178_v16, 0.0 }
 0x3e1   : > { %v2258_v2 = vpack.c.bf16 %v2234_v18, %v2232_v17 }
 0x3e2   : > { %v2259_v21 = vpack.c.bf16 %v2235_v20, %v2233_v19  ;;  %v2181_v22 = vpop.f32.mrb[80].mxu0  ;;  %v2300_v19 = vld [vmem:[%s5452_s12] sm:$0x3] }
 0x3e3   : > { %v2182_v26 = vadd.f32 %v2181_v22, %v5093_v24  ;;  %v2183_v1 = vpop.f32.mrb[81].mxu0  ;;  %v5134_v20 = vrot.slane %v2300_v19, %v4604_v62 }
 0x3e4   : > { %v2184_v23 = vadd.f32 %v2183_v1, %v5096_v25  ;;  %v2185_v27 = vpop.f32.mrb[82].mxu0  ;;  %2534 = vmatprep.mubr.bf16.mxu1 %v2259_v21 }
 0x3e5   : > { %v2186_v28 = vadd.f32 %v2185_v27, %v5093_v24  ;;  %v2187_v29 = vpop.f32.mrb[83].mxu0  ;;  %2535 = vmatmul.mubr.bf16.gmra.mrb[76].mxu1 %v2258_v2  ;;  %v2236_v33 = vmax.f32 %v2182_v26, 0.0 }
 0x3e6   : > { %v2188_v30 = vadd.f32 %v2187_v29, %v5096_v25  ;;  %v2237_v35 = vmax.f32 %v2184_v23, 0.0 }
 0x3e7   : > { %v2238_v34 = vmax.f32 %v2186_v28, 0.0 }
 0x3e8   : > { %v2239_v36 = vmax.f32 %v2188_v30, 0.0 }
 0x3e9   : > { %v2260_v37 = vpack.c.bf16 %v2238_v34, %v2236_v33 }
 0x3ea   : > { %v2261_v38 = vpack.c.bf16 %v2239_v36, %v2237_v35  ;;  %v2191_v39 = vpop.f32.mrb[84].mxu0 }
 0x3eb   : > { %v2192_v40 = vadd.f32 %v2191_v39, %v5093_v24  ;;  %v2193_v41 = vpop.f32.mrb[85].mxu0 }
 0x3ec   : > { %v2194_v42 = vadd.f32 %v2193_v41, %v5096_v25  ;;  %v2195_v43 = vpop.f32.mrb[86].mxu0  ;;  %2544 = vmatprep.mubr.bf16.mxu1 %v2261_v38 }
 0x3ed   : > { %v2196_v44 = vadd.f32 %v2195_v43, %v5093_v24  ;;  %v2197_v45 = vpop.f32.mrb[87].mxu0  ;;  %2545 = vmatmul.mubr.bf16.gmra.mrb[80].mxu1 %v2260_v37  ;;  %v2240_v47 = vmax.f32 %v2192_v40, 0.0 }
 0x3ee   : > { %v2198_v46 = vadd.f32 %v2197_v45, %v5096_v25  ;;  %v2241_v49 = vmax.f32 %v2194_v42, 0.0 }
 0x3ef   : > { %v2242_v48 = vmax.f32 %v2196_v44, 0.0 }
 0x3f0   : > { %v2243_v50 = vmax.f32 %v2198_v46, 0.0 }
 0x3f1   : > { %v2262_v51 = vpack.c.bf16 %v2242_v48, %v2240_v47 }
 0x3f2   : > { %v2263_v31 = vpack.c.bf16 %v2243_v50, %v2241_v49  ;;  %v2201_v32 = vpop.f32.mrb[88].mxu0 }
 0x3f3   : > { %v2202_v52 = vadd.f32 %v2201_v32, %v5093_v24  ;;  %v2203_v53 = vpop.f32.mrb[89].mxu0 }
 0x3f4   : > { %v2204_v54 = vadd.f32 %v2203_v53, %v5096_v25  ;;  %v2205_v55 = vpop.f32.mrb[90].mxu0  ;;  %2554 = vmatprep.mubr.bf16.mxu1 %v2263_v31 }
 0x3f5   : > { %v2206_v56 = vadd.f32 %v2205_v55, %v5093_v24  ;;  %v2207_v57 = vpop.f32.mrb[91].mxu0  ;;  %2555 = vmatmul.mubr.bf16.gmra.mrb[84].mxu1 %v2262_v51  ;;  %v2244_v59 = vmax.f32 %v2202_v52, 0.0 }
 0x3f6   : > { %v2208_v58 = vadd.f32 %v2207_v57, %v5096_v25  ;;  %v2245_v61 = vmax.f32 %v2204_v54, 0.0 }
 0x3f7   : > { %v2246_v60 = vmax.f32 %v2206_v56, 0.0 }
 0x3f8   : > { %v2247_v63 = vmax.f32 %v2208_v58, 0.0 }
 0x3f9   : > { %v2264_v3 = vpack.c.bf16 %v2246_v60, %v2244_v59 }
 0x3fa   : > { %v2265_v4 = vpack.c.bf16 %v2247_v63, %v2245_v61  ;;  %v2211_v5 = vpop.f32.mrb[92].mxu0 }
 0x3fb   : > { %v2212_v6 = vadd.f32 %v2211_v5, %v5093_v24  ;;  %v2213_v7 = vpop.f32.mrb[93].mxu0 }
 0x3fc   : > { %v2214_v8 = vadd.f32 %v2213_v7, %v5096_v25  ;;  %v2215_v9 = vpop.f32.mrb[94].mxu0  ;;  %2564 = vmatprep.mubr.bf16.mxu1 %v2265_v4 }
 0x3fd   : > { %v2216_v10 = vadd.f32 %v2215_v9, %v5093_v24  ;;  %v2217_v11 = vpop.f32.mrb[95].mxu0  ;;  %2565 = vmatmul.mubr.bf16.gmra.mrb[88].mxu1 %v2264_v3  ;;  %v2248_v13 = vmax.f32 %v2212_v6, 0.0  ;;  %v5137_v24 = vrot.slane %v2300_v19, %v4609_v0 }
 0x3fe   : > { %v2218_v12 = vadd.f32 %v2217_v11, %v5096_v25  ;;  %v2249_v15 = vmax.f32 %v2214_v8, 0.0 }
 0x3ff   : > { %v2250_v14 = vmax.f32 %v2216_v10, 0.0 }
 0x400   : > { %v2251_v16 = vmax.f32 %v2218_v12, 0.0 }
 0x401   : > { %v2266_v17 = vpack.c.bf16 %v2250_v14, %v2248_v13 }
 0x402   : > { %v2267_v18 = vpack.c.bf16 %v2251_v16, %v2249_v15 }
 0x404   : > { %2574 = vmatprep.mubr.bf16.mxu1 %v2267_v18 }
 0x405   : > { %2575 = vmatmul.mubr.bf16.gmra.mrb[92].mxu1 %v2266_v17 }
 0x4a0   : > { %v2506_v2 = vpop.f32.mrb[64].mxu1 }
 0x4a1   : > { %v2507_v25 = vadd.f32 %v2506_v2, %v5134_v20  ;;  %v2508_v21 = vpop.f32.mrb[65].mxu1 }
 0x4a2   : > { %v2509_v22 = vadd.f32 %v2508_v21, %v5137_v24  ;;  %v2510_v26 = vpop.f32.mrb[66].mxu1 }
 0x4a3   : > { %v2511_v1 = vadd.f32 %v2510_v26, %v5134_v20  ;;  %v2512_v23 = vpop.f32.mrb[67].mxu1  ;;  %v2585_v28 = vsub.f32 0.0, %v2507_v25 }
 0x4a4   : > { %v2513_v27 = vadd.f32 %v2512_v23, %v5137_v24  ;;  %v2586_v30 = vsub.f32 0.0, %v2509_v22 }
 0x4a5   : > { %v2587_v29 = vsub.f32 0.0, %v2511_v1 }
 0x4a6   : > { %v2588_v62 = vsub.f32 0.0, %v2513_v27 }
 0x4a7   : > { %v2617_v33 = vpack.c.bf16 %v2587_v29, %v2585_v28 }
 0x4a8   : > { %v2618_v34 = vpack.c.bf16 %v2588_v62, %v2586_v30  ;;  %v2516_v0 = vpop.f32.mrb[68].mxu1 }
 0x4a9   : > { %v2634_v35 = vmul.bf16 1069105081, %v2617_v33  ;;  %v2517_v36 = vadd.f32 %v2516_v0, %v5134_v20  ;;  %v2518_v37 = vpop.f32.mrb[69].mxu1 }
 0x4aa   : > { %v2637_v38 = vmul.bf16 1069105081, %v2618_v34  ;;  %v2519_v39 = vadd.f32 %v2518_v37, %v5137_v24  ;;  %v2520_v40 = vpop.f32.mrb[70].mxu1 }
 0x4ab   : > { %3982 = vpow.bf16 %v2634_v35  ;;  %v2521_v41 = vadd.f32 %v2520_v40, %v5134_v20  ;;  %v2522_v42 = vpop.f32.mrb[71].mxu1  ;;  %v2589_v44 = vsub.f32 0.0, %v2517_v36 }
 0x4ac   : > { %3984 = vpow.bf16 %v2637_v38  ;;  %v2523_v43 = vadd.f32 %v2522_v42, %v5137_v24  ;;  %v2590_v46 = vsub.f32 0.0, %v2519_v39 }
 0x4ad   : > { %v2591_v45 = vsub.f32 0.0, %v2521_v41 }
 0x4ae   : > { %v2592_v47 = vsub.f32 0.0, %v2523_v43 }
 0x4af   : > { %v2619_v48 = vpack.c.bf16 %v2591_v45, %v2589_v44 }
 0x4b0   : > { %v2620_v49 = vpack.c.bf16 %v2592_v47, %v2590_v46  ;;  %v2526_v50 = vpop.f32.mrb[72].mxu1 }
 0x4b1   : > { %v2640_v51 = vmul.bf16 1069105081, %v2619_v48  ;;  %v2527_v31 = vadd.f32 %v2526_v50, %v5134_v20  ;;  %v2528_v32 = vpop.f32.mrb[73].mxu1 }
 0x4b2   : > { %v2643_v52 = vmul.bf16 1069105081, %v2620_v49  ;;  %v2529_v53 = vadd.f32 %v2528_v32, %v5137_v24  ;;  %v2530_v54 = vpop.f32.mrb[74].mxu1 }
 0x4b3   : > { %3986 = vpow.bf16 %v2640_v51  ;;  %v2531_v55 = vadd.f32 %v2530_v54, %v5134_v20  ;;  %v2532_v56 = vpop.f32.mrb[75].mxu1  ;;  %v2593_v58 = vsub.f32 0.0, %v2527_v31 }
 0x4b4   : > { %3988 = vpow.bf16 %v2643_v52  ;;  %v2533_v57 = vadd.f32 %v2532_v56, %v5137_v24  ;;  %v2594_v61 = vsub.f32 0.0, %v2529_v53 }
 0x4b5   : > { %v2595_v59 = vsub.f32 0.0, %v2531_v55 }
 0x4b6   : > { %v3983_v60 = vpop.eup %3982  ;;  %v2596_v63 = vsub.f32 0.0, %v2533_v57 }
 0x4b7   : > { %v3985_v3 = vpop.eup %3984  ;;  %v2681_v4 = vunpack.c.l.bf16 %v3983_v60  ;;  %v2683_v5 = vunpack.c.h.bf16 %v3983_v60  ;;  %v2621_v6 = vpack.c.bf16 %v2595_v59, %v2593_v58 }
 0x4b8   : > { %v2682_v7 = vunpack.c.l.bf16 %v3985_v3  ;;  %v2684_v8 = vunpack.c.h.bf16 %v3985_v3  ;;  %v2622_v9 = vpack.c.bf16 %v2596_v63, %v2594_v61  ;;  %v2536_v10 = vpop.f32.mrb[76].mxu1 }
 0x4b9   : > { %v2713_v11 = vadd.f32 1.0, %v2681_v4  ;;  %v2715_v12 = vadd.f32 1.0, %v2683_v5  ;;  %v2537_v13 = vadd.f32 %v2536_v10, %v5134_v20  ;;  %v2538_v14 = vpop.f32.mrb[77].mxu1  ;;  %v2646_v19 = vmul.bf16 1069105081, %v2621_v6 }
 0x4ba   : > { %v2714_v15 = vadd.f32 1.0, %v2682_v7  ;;  %v2716_v16 = vadd.f32 1.0, %v2684_v8  ;;  %v2539_v17 = vadd.f32 %v2538_v14, %v5137_v24  ;;  %v2540_v18 = vpop.f32.mrb[78].mxu1  ;;  %v2649_v21 = vmul.bf16 1069105081, %v2622_v9 }
 0x4bb   : > { %3990 = vrcp.f32 %v2713_v11  ;;  %v2541_v2 = vadd.f32 %v2540_v18, %v5134_v20  ;;  %v2542_v25 = vpop.f32.mrb[79].mxu1  ;;  %v2597_v26 = vsub.f32 0.0, %v2537_v13 }
 0x4bc   : > { %3992 = vrcp.f32 %v2715_v12  ;;  %v2543_v22 = vadd.f32 %v2542_v25, %v5137_v24  ;;  %v2598_v27 = vsub.f32 0.0, %v2539_v17 }
 0x4bd   : > { %3994 = vrcp.f32 %v2714_v15  ;;  %v2599_v1 = vsub.f32 0.0, %v2541_v2 }
 0x4be   : > { %v3987_v23 = vpop.eup %3986  ;;  %3996 = vrcp.f32 %v2716_v16  ;;  %v2600_v28 = vsub.f32 0.0, %v2543_v22 }
 0x4bf   : > { %v3989_v29 = vpop.eup %3988  ;;  %v2685_v30 = vunpack.c.l.bf16 %v3987_v23  ;;  %v2687_v62 = vunpack.c.h.bf16 %v3987_v23  ;;  %3998 = vpow.bf16 %v2646_v19  ;;  %v2623_v33 = vpack.c.bf16 %v2599_v1, %v2597_v26 }
 0x4c0   : > { %v2686_v34 = vunpack.c.l.bf16 %v3989_v29  ;;  %v2688_v0 = vunpack.c.h.bf16 %v3989_v29  ;;  %4000 = vpow.bf16 %v2649_v21  ;;  %v2624_v35 = vpack.c.bf16 %v2600_v28, %v2598_v27  ;;  %v2546_v36 = vpop.f32.mrb[80].mxu1 }
 0x4c1   : > { %v2717_v37 = vadd.f32 1.0, %v2685_v30  ;;  %v2719_v38 = vadd.f32 1.0, %v2687_v62  ;;  %v2547_v39 = vadd.f32 %v2546_v36, %v5134_v20  ;;  %v2548_v40 = vpop.f32.mrb[81].mxu1  ;;  %v2652_v45 = vmul.bf16 1069105081, %v2623_v33 }
 0x4c2   : > { %v2718_v41 = vadd.f32 1.0, %v2686_v34  ;;  %v2720_v42 = vadd.f32 1.0, %v2688_v0  ;;  %v2549_v43 = vadd.f32 %v2548_v40, %v5137_v24  ;;  %v2550_v44 = vpop.f32.mrb[82].mxu1  ;;  %v2655_v48 = vmul.bf16 1069105081, %v2624_v35 }
 0x4c3   : > { %4002 = vrcp.f32 %v2717_v37  ;;  %v2551_v46 = vadd.f32 %v2550_v44, %v5134_v20  ;;  %v2552_v47 = vpop.f32.mrb[83].mxu1  ;;  %v2601_v51 = vsub.f32 0.0, %v2547_v39 }
 0x4c4   : > { %4004 = vrcp.f32 %v2719_v38  ;;  %v2553_v49 = vadd.f32 %v2552_v47, %v5137_v24  ;;  %v2602_v52 = vsub.f32 0.0, %v2549_v43 }
 0x4c5   : > { %v3991_v50 = vpop.eup %3990  ;;  %4006 = vrcp.f32 %v2718_v41  ;;  %v2603_v31 = vsub.f32 0.0, %v2551_v46 }
 0x4c6   : > { %v3993_v32 = vpop.eup %3992  ;;  %2777 = vst [vmem:[%s5161_s29] sm:$0xff] %v3991_v50  ;;  %4008 = vrcp.f32 %v2720_v42  ;;  %v2604_v53 = vsub.f32 0.0, %v2553_v49 }
 0x4c7   : > { %v3995_v54 = vpop.eup %3994  ;;  %2779 = vst [vmem:[%s5161_s29 + $0x10] sm:$0xff] %v3993_v32  ;;  %4010 = vpow.bf16 %v2652_v45  ;;  %v2625_v55 = vpack.c.bf16 %v2603_v31, %v2601_v51 }
 0x4c8   : > { %v3997_v56 = vpop.eup %3996  ;;  %2778 = vst [vmem:[%s5161_s29 + $0x8] sm:$0xff] %v3995_v54  ;;  %4012 = vpow.bf16 %v2655_v48  ;;  %v2626_v57 = vpack.c.bf16 %v2604_v53, %v2602_v52  ;;  %v2556_v58 = vpop.f32.mrb[84].mxu1 }
 0x4c9   : > { %2780 = vst [vmem:[%s5161_s29 + $0x18] sm:$0xff] %v3997_v56  ;;  %v2658_v59 = vmul.bf16 1069105081, %v2625_v55  ;;  %v2558_v60 = vpop.f32.mrb[85].mxu1  ;;  %v2557_v3 = vadd.f32 %v2556_v58, %v5134_v20 }
 0x4ca   : > { %v3999_v61 = vpop.eup %3998  ;;  %v2661_v63 = vmul.bf16 1069105081, %v2626_v57  ;;  %v2560_v4 = vpop.f32.mrb[86].mxu1  ;;  %v2559_v8 = vadd.f32 %v2558_v60, %v5137_v24 }
 0x4cb   : > { %v4001_v5 = vpop.eup %4000  ;;  %v2689_v6 = vunpack.c.l.bf16 %v3999_v61  ;;  %v2691_v7 = vunpack.c.h.bf16 %v3999_v61  ;;  %4014 = vpow.bf16 %v2658_v59  ;;  %v2562_v9 = vpop.f32.mrb[87].mxu1  ;;  %v2561_v15 = vadd.f32 %v2560_v4, %v5134_v20 }
 0x4cc   : > { %v2690_v10 = vunpack.c.l.bf16 %v4001_v5  ;;  %v2692_v11 = vunpack.c.h.bf16 %v4001_v5  ;;  %4016 = vpow.bf16 %v2661_v63  ;;  %v2563_v16 = vadd.f32 %v2562_v9, %v5137_v24 }
 0x4cd   : > { %v4003_v12 = vpop.eup %4002  ;;  %v2721_v13 = vadd.f32 1.0, %v2689_v6  ;;  %v2723_v14 = vadd.f32 1.0, %v2691_v7  ;;  %v2605_v2 = vsub.f32 0.0, %v2557_v3  ;;  %v2606_v21 = vsub.f32 0.0, %v2559_v8 }
 0x4ce   : > { %v4005_v17 = vpop.eup %4004  ;;  %2781 = vst [vmem:[%s5161_s29 + $0x20] sm:$0xff] %v4003_v12  ;;  %v2722_v18 = vadd.f32 1.0, %v2690_v10  ;;  %v2724_v19 = vadd.f32 1.0, %v2692_v11  ;;  %v2607_v22 = vsub.f32 0.0, %v2561_v15  ;;  %v2608_v26 = vsub.f32 0.0, %v2563_v16 }
 0x4cf   : > { %v4007_v25 = vpop.eup %4006  ;;  %2783 = vst [vmem:[%s5161_s29 + $0x30] sm:$0xff] %v4005_v17  ;;  %4018 = vrcp.f32 %v2721_v13 }
 0x4d0   : > { %v4009_v1 = vpop.eup %4008  ;;  %2782 = vst [vmem:[%s5161_s29 + $0x28] sm:$0xff] %v4007_v25  ;;  %4020 = vrcp.f32 %v2723_v14  ;;  %v2566_v23 = vpop.f32.mrb[88].mxu1  ;;  %v2627_v27 = vpack.c.bf16 %v2607_v22, %v2605_v2  ;;  %v2628_v28 = vpack.c.bf16 %v2608_v26, %v2606_v21 }
 0x4d1   : > { %2784 = vst [vmem:[%s5161_s29 + $0x38] sm:$0xff] %v4009_v1  ;;  %4022 = vrcp.f32 %v2722_v18  ;;  %v2567_v29 = vadd.f32 %v2566_v23, %v5134_v20  ;;  %v2568_v30 = vpop.f32.mrb[89].mxu1 }
 0x4d2   : > { %v4011_v62 = vpop.eup %4010  ;;  %4024 = vrcp.f32 %v2724_v19  ;;  %v2569_v33 = vadd.f32 %v2568_v30, %v5137_v24  ;;  %v2570_v34 = vpop.f32.mrb[90].mxu1  ;;  %v2664_v37 = vmul.bf16 1069105081, %v2627_v27  ;;  %v2667_v38 = vmul.bf16 1069105081, %v2628_v28 }
 0x4d3   : > { %v4013_v0 = vpop.eup %4012  ;;  %v2693_v35 = vunpack.c.l.bf16 %v4011_v62  ;;  %v2695_v36 = vunpack.c.h.bf16 %v4011_v62  ;;  %v2572_v39 = vpop.f32.mrb[91].mxu1  ;;  %v2609_v42 = vsub.f32 0.0, %v2567_v29  ;;  %v2571_v46 = vadd.f32 %v2570_v34, %v5134_v20 }
 0x4d4   : > { %v2694_v40 = vunpack.c.l.bf16 %v4013_v0  ;;  %v2696_v41 = vunpack.c.h.bf16 %v4013_v0  ;;  %v2610_v43 = vsub.f32 0.0, %v2569_v33  ;;  %4026 = vpow.bf16 %v2664_v37 }
 0x4d5   : > { %v2725_v44 = vadd.f32 1.0, %v2693_v35  ;;  %v2727_v45 = vadd.f32 1.0, %v2695_v36  ;;  %4028 = vpow.bf16 %v2667_v38  ;;  %v2573_v50 = vadd.f32 %v2572_v39, %v5137_v24 }
 0x4d6   : > { %v4015_v47 = vpop.eup %4014  ;;  %v2726_v48 = vadd.f32 1.0, %v2694_v40  ;;  %v2728_v49 = vadd.f32 1.0, %v2696_v41  ;;  %v2611_v52 = vsub.f32 0.0, %v2571_v46 }
 0x4d7   : > { %v4017_v51 = vpop.eup %4016  ;;  %4030 = vrcp.f32 %v2725_v44  ;;  %v2697_v31 = vunpack.c.l.bf16 %v4015_v47  ;;  %v2699_v32 = vunpack.c.h.bf16 %v4015_v47  ;;  %v2612_v55 = vsub.f32 0.0, %v2573_v50 }
 0x4d8   : > { %4032 = vrcp.f32 %v2727_v45  ;;  %v2698_v53 = vunpack.c.l.bf16 %v4017_v51  ;;  %v2700_v54 = vunpack.c.h.bf16 %v4017_v51  ;;  %v2576_v56 = vpop.f32.mrb[92].mxu1  ;;  %v2629_v60 = vpack.c.bf16 %v2611_v52, %v2609_v42 }
 0x4d9   : > { %v4019_v57 = vpop.eup %4018  ;;  %4034 = vrcp.f32 %v2726_v48  ;;  %v2729_v58 = vadd.f32 1.0, %v2697_v31  ;;  %v2731_v59 = vadd.f32 1.0, %v2699_v32  ;;  %v2578_v61 = vpop.f32.mrb[93].mxu1  ;;  %v2630_v5 = vpack.c.bf16 %v2612_v55, %v2610_v43 }
 0x4da   : > { %v4021_v63 = vpop.eup %4020  ;;  %2785 = vst [vmem:[%s5161_s29 + $0x40] sm:$0xff] %v4019_v57  ;;  %4036 = vrcp.f32 %v2728_v49  ;;  %v2730_v3 = vadd.f32 1.0, %v2698_v53  ;;  %v2732_v4 = vadd.f32 1.0, %v2700_v54  ;;  %v2580_v6 = vpop.f32.mrb[94].mxu1  ;;  %v2670_v8 = vmul.bf16 1069105081, %v2629_v60 }
 0x4db   : > { %v4023_v7 = vpop.eup %4022  ;;  %2787 = vst [vmem:[%s5161_s29 + $0x50] sm:$0xff] %v4021_v63  ;;  %4038 = vrcp.f32 %v2729_v58  ;;  %v2577_v9 = vadd.f32 %v2576_v56, %v5134_v20  ;;  %v2579_v10 = vadd.f32 %v2578_v61, %v5137_v24  ;;  %v2582_v11 = vpop.f32.mrb[95].mxu1  ;;  %v2673_v13 = vmul.bf16 1069105081, %v2630_v5 }
 0x4dc   : > { %v4025_v12 = vpop.eup %4024  ;;  %2786 = vst [vmem:[%s5161_s29 + $0x48] sm:$0xff] %v4023_v7  ;;  %4040 = vrcp.f32 %v2731_v59  ;;  %v2581_v14 = vadd.f32 %v2580_v6, %v5134_v20  ;;  %v2583_v15 = vadd.f32 %v2582_v11, %v5137_v24 }
 0x4dd   : > { %2788 = vst [vmem:[%s5161_s29 + $0x58] sm:$0xff] %v4025_v12  ;;  %4042 = vrcp.f32 %v2730_v3  ;;  %v2613_v16 = vsub.f32 0.0, %v2577_v9  ;;  %v2614_v17 = vsub.f32 0.0, %v2579_v10 }
 0x4de   : > { %4044 = vrcp.f32 %v2732_v4  ;;  %v2615_v18 = vsub.f32 0.0, %v2581_v14  ;;  %v2616_v19 = vsub.f32 0.0, %v2583_v15 }
 0x4df   : > { %4046 = vpow.bf16 %v2670_v8  ;;  %v4027_v2 = vpop.eup %4026 }
 0x4e0   : > { %4048 = vpow.bf16 %v2673_v13  ;;  %v2631_v25 = vpack.c.bf16 %v2615_v18, %v2613_v16  ;;  %v2632_v21 = vpack.c.bf16 %v2616_v19, %v2614_v17  ;;  %v4029_v22 = vpop.eup %4028  ;;  %v2701_v20 = vunpack.c.l.bf16 %v4027_v2 }
 0x4e1   : > { %v4031_v26 = vpop.eup %4030  ;;  %v2703_v1 = vunpack.c.h.bf16 %v4027_v2  ;;  %v2702_v23 = vunpack.c.l.bf16 %v4029_v22  ;;  %v2704_v27 = vunpack.c.h.bf16 %v4029_v22 }
 0x4e2   : > { %v4033_v24 = vpop.eup %4032  ;;  %2789 = vst [vmem:[%s5161_s29 + $0x60] sm:$0xff] %v4031_v26  ;;  %v2676_v28 = vmul.bf16 1069105081, %v2631_v25  ;;  %v2733_v30 = vadd.f32 1.0, %v2701_v20  ;;  %v2679_v36 = vmul.bf16 1069105081, %v2632_v21 }
 0x4e3   : > { %v4035_v29 = vpop.eup %4034  ;;  %2791 = vst [vmem:[%s5161_s29 + $0x70] sm:$0xff] %v4033_v24  ;;  %v2735_v62 = vadd.f32 1.0, %v2703_v1  ;;  %v2734_v34 = vadd.f32 1.0, %v2702_v23  ;;  %v2736_v0 = vadd.f32 1.0, %v2704_v27 }
 0x4e4   : > { %v4037_v33 = vpop.eup %4036  ;;  %2790 = vst [vmem:[%s5161_s29 + $0x68] sm:$0xff] %v4035_v29  ;;  %4050 = vpow.bf16 %v2676_v28 }
 0x4e5   : > { %v4039_v35 = vpop.eup %4038  ;;  %2792 = vst [vmem:[%s5161_s29 + $0x78] sm:$0xff] %v4037_v33  ;;  %4052 = vrcp.f32 %v2733_v30 }
 0x4e6   : > { %v4041_v37 = vpop.eup %4040  ;;  %2793 = vst [vmem:[%s5161_s29 + $0x80] sm:$0xff] %v4039_v35  ;;  %4054 = vrcp.f32 %v2735_v62 }
 0x4e7   : > { %v4043_v38 = vpop.eup %4042  ;;  %2795 = vst [vmem:[%s5161_s29 + $0x90] sm:$0xff] %v4041_v37  ;;  %4056 = vrcp.f32 %v2734_v34 }
 0x4e8   : > { %v4045_v39 = vpop.eup %4044  ;;  %2794 = vst [vmem:[%s5161_s29 + $0x88] sm:$0xff] %v4043_v38  ;;  %4058 = vrcp.f32 %v2736_v0 }
 0x4e9   : > { %2796 = vst [vmem:[%s5161_s29 + $0x98] sm:$0xff] %v4045_v39  ;;  %4060 = vpow.bf16 %v2679_v36 }
 0x4ea   : > { %v4047_v40 = vpop.eup %4046 }
 0x4eb   : > { %v4049_v41 = vpop.eup %4048  ;;  %v2705_v42 = vunpack.c.l.bf16 %v4047_v40  ;;  %v2707_v43 = vunpack.c.h.bf16 %v4047_v40 }
 0x4ec   : > { %v2706_v44 = vunpack.c.l.bf16 %v4049_v41  ;;  %v2708_v45 = vunpack.c.h.bf16 %v4049_v41 }
 0x4ed   : > { %v2737_v46 = vadd.f32 1.0, %v2705_v42  ;;  %v2739_v47 = vadd.f32 1.0, %v2707_v43 }
 0x4ee   : > { %v2738_v48 = vadd.f32 1.0, %v2706_v44  ;;  %v2740_v49 = vadd.f32 1.0, %v2708_v45 }
 0x4ef   : > { %v4051_v50 = vpop.eup %4050  ;;  %4062 = vrcp.f32 %v2737_v46 }
 0x4f0   : > { %v4053_v51 = vpop.eup %4052  ;;  %4064 = vrcp.f32 %v2739_v47  ;;  %v2709_v32 = vunpack.c.l.bf16 %v4051_v50  ;;  %v2711_v52 = vunpack.c.h.bf16 %v4051_v50 }
 0x4f1   : > { %v4055_v31 = vpop.eup %4054  ;;  %2797 = vst [vmem:[%s5161_s29 + $0xa0] sm:$0xff] %v4053_v51  ;;  %4066 = vrcp.f32 %v2738_v48 }
 0x4f2   : > { %v4057_v53 = vpop.eup %4056  ;;  %2799 = vst [vmem:[%s5161_s29 + $0xb0] sm:$0xff] %v4055_v31  ;;  %4068 = vrcp.f32 %v2740_v49  ;;  %v2741_v55 = vadd.f32 1.0, %v2709_v32  ;;  %v2743_v56 = vadd.f32 1.0, %v2711_v52 }
 0x4f3   : > { %v4059_v54 = vpop.eup %4058  ;;  %2798 = vst [vmem:[%s5161_s29 + $0xa8] sm:$0xff] %v4057_v53 }
 0x4f4   : > { %2800 = vst [vmem:[%s5161_s29 + $0xb8] sm:$0xff] %v4059_v54  ;;  %v4061_v57 = vpop.eup %4060  ;;  %4070 = vrcp.f32 %v2741_v55 }
 0x4f5   : > { %4072 = vrcp.f32 %v2743_v56  ;;  %v2710_v58 = vunpack.c.l.bf16 %v4061_v57  ;;  %v2712_v59 = vunpack.c.h.bf16 %v4061_v57 }
 0x4f7   : > { %v2742_v60 = vadd.f32 1.0, %v2710_v58  ;;  %v2744_v61 = vadd.f32 1.0, %v2712_v59 }
 0x4f9   : > { %v4063_v63 = vpop.eup %4062  ;;  %4074 = vrcp.f32 %v2742_v60 }
 0x4fa   : > { %v4065_v3 = vpop.eup %4064  ;;  %2801 = vst [vmem:[%s5161_s29 + $0xc0] sm:$0xff] %v4063_v63  ;;  %4076 = vrcp.f32 %v2744_v61 }
 0x4fb   : > { %v4067_v4 = vpop.eup %4066  ;;  %2803 = vst [vmem:[%s5161_s29 + $0xd0] sm:$0xff] %v4065_v3 }
 0x4fc   : > { %v4069_v5 = vpop.eup %4068  ;;  %2802 = vst [vmem:[%s5161_s29 + $0xc8] sm:$0xff] %v4067_v4 }
 0x4fd   : > { %2804 = vst [vmem:[%s5161_s29 + $0xd8] sm:$0xff] %v4069_v5 }
 0x4fe   : > { %v4071_v6 = vpop.eup %4070 }
 0x4ff   : > { %v4073_v7 = vpop.eup %4072  ;;  %2805 = vst [vmem:[%s5161_s29 + $0xe0] sm:$0xff] %v4071_v6  ;;  %2819 = sbr.rel (!%p4330_p4) target bundleno = 1342 (0x53e), region = 76 }
 0x500   : > { %2807 = vst [vmem:[%s5161_s29 + $0xf0] sm:$0xff] %v4073_v7 }
 0x503   : > { %v4075_v8 = vpop.eup %4074 }
 0x504   : > { %v4077_v9 = vpop.eup %4076  ;;  %2806 = vst [vmem:[%s5161_s29 + $0xe8] sm:$0xff] %v4075_v8 }
 0x505   : > { %2808 = vst [vmem:[%s5161_s29 + $0xf8] sm:$0xff] %v4077_v9 }
 0x506   : > { %s5481_s24 = smov (!%p2822_p8, %s2821_s24), 16 }
 0x507   : > { %s3502_s15 = sshll.u32 %s5481_s24, 8 }
 0x508   : > { %p3475_p9 = scmp.eq.s32.totalorder %s3502_s15, 0 }
 0x509   : > { %s5220_s25 = sshrl.u32 (!%p3475_p9), %s5481_s24, 4 }
 0x50a   : > { %2832 = sbr.rel (%p3475_p9) target bundleno = 1342 (0x53e), region = 80  ;;  %p3476_p10 = scmp.le.s32.totalorder (!%p3475_p9), %s5220_s25, 0 }
 0x511   : > { %3200 = sbr.rel (%p3476_p10) target bundleno = 1321 (0x529), region = 200  ;;  %s5469_s23 = smov (!%p3476_p10), %s5214_s27 }
 0x512   : > { %s5470_s18 = smov (!%p3476_p10), %s5161_s29  ;;  %s5229_s28 = smov (!%p3476_p10), 0  }
 0x513   : > { %s5231_s30 = smov (!%p3476_p10), 0  }
 0x518 LB: >> { %v2845_v10 = vld [vmem:[%s4172_s18] sm:$0xff]  ;;  %v2847_v11 = vld [vmem:[%s4172_s18 + $0x10] sm:$0xff]  ;;  %s2909_s20 = sadd.s32 1, %s4176_s28  ;;  %v2877_v1 = vld [vmem:[%s4172_s18 + $0x8] sm:$0xff]  ;;  %s2839_s30 = sadd.s32 1, %s4180_s30   ;;  %s4180_s30 = sphi %s5231_s30, %s2839_s30   ;;  %s4176_s28 = sphi %s5229_s28, %s5473_s28   ;;  %s4172_s18 = sphi %s5470_s18, %s5472_s18   ;;  %s4168_s23 = sphi %s5469_s23, %s5471_s23  }
 0x519   : >> { %v2849_v12 = vld [vmem:[%s4172_s18 + $0x20] sm:$0xff]  ;;  %2846 = vst [vmem:[%s4168_s23] sm:$0xff] %v2845_v10  ;;  %2848 = vst [vmem:[%s4168_s23 + $0x10] sm:$0xff] %v2847_v11  ;;  %v2851_v13 = vld [vmem:[%s4172_s18 + $0x30] sm:$0xff]  ;;  %p2910_p11 = scmp.ge.s32.totalorder %s2909_s20, %s5220_s25  ;;  %p2838_p12 = scmp.ge.s32.totalorder %s2839_s30, %s5220_s25 }
 0x51a   : >> { %2850 = vst [vmem:[%s4168_s23 + $0x20] sm:$0xff] %v2849_v12  ;;  %v2853_v14 = vld [vmem:[%s4172_s18 + $0x40] sm:$0xff]  ;;  %v2855_v15 = vld [vmem:[%s4172_s18 + $0x50] sm:$0xff]  ;;  %2852 = vst [vmem:[%s4168_s23 + $0x30] sm:$0xff] %v2851_v13 }
 0x51b   : >> { %2854 = vst [vmem:[%s4168_s23 + $0x40] sm:$0xff] %v2853_v14  ;;  %2856 = vst [vmem:[%s4168_s23 + $0x50] sm:$0xff] %v2855_v15  ;;  %v2857_v16 = vld [vmem:[%s4172_s18 + $0x60] sm:$0xff]  ;;  %v2859_v17 = vld [vmem:[%s4172_s18 + $0x70] sm:$0xff]  ;;  %s5483_s20 = smov (%p2910_p11, %s2909_s20), 0 }
 0x51c   : >> { %v2861_v18 = vld [vmem:[%s4172_s18 + $0x80] sm:$0xff]  ;;  %2858 = vst [vmem:[%s4168_s23 + $0x60] sm:$0xff] %v2857_v16  ;;  %2860 = vst [vmem:[%s4168_s23 + $0x70] sm:$0xff] %v2859_v17  ;;  %v2863_v19 = vld [vmem:[%s4172_s18 + $0x90] sm:$0xff]  ;;  %s3477_s26 = sshll.u32 %s5483_s20, 8 }
 0x51d   : >> { %2862 = vst [vmem:[%s4168_s23 + $0x80] sm:$0xff] %v2861_v18  ;;  %v2865_v2 = vld [vmem:[%s4172_s18 + $0xa0] sm:$0xff]  ;;  %v2867_v25 = vld [vmem:[%s4172_s18 + $0xb0] sm:$0xff]  ;;  %2864 = vst [vmem:[%s4168_s23 + $0x90] sm:$0xff] %v2863_v19  ;;  %s5287_s15 = scalar_lea.vmem %s5161_s29, %s3477_s26 [#allocation2]   ;;  %s2915_s28 = scalar_lea.vmem %s5214_s27, %s3477_s26  }
 0x51e   : >> { %2866 = vst [vmem:[%s4168_s23 + $0xa0] sm:$0xff] %v2865_v2  ;;  %2868 = vst [vmem:[%s4168_s23 + $0xb0] sm:$0xff] %v2867_v25  ;;  %v2869_v21 = vld [vmem:[%s4172_s18 + $0xc0] sm:$0xff]  ;;  %v2871_v22 = vld [vmem:[%s4172_s18 + $0xd0] sm:$0xff] }
 0x51f   : >> { %v2873_v26 = vld [vmem:[%s4172_s18 + $0xe0] sm:$0xff]  ;;  %2870 = vst [vmem:[%s4168_s23 + $0xc0] sm:$0xff] %v2869_v21  ;;  %2872 = vst [vmem:[%s4168_s23 + $0xd0] sm:$0xff] %v2871_v22  ;;  %v2875_v20 = vld [vmem:[%s4172_s18 + $0xf0] sm:$0xff] }
 0x520   : >> { %2874 = vst [vmem:[%s4168_s23 + $0xe0] sm:$0xff] %v2873_v26  ;;  %v2879_v24 = vld [vmem:[%s4172_s18 + $0x18] sm:$0xff]  ;;  %2876 = vst [vmem:[%s4168_s23 + $0xf0] sm:$0xff] %v2875_v20  ;;  %v2881_v23 = vld [vmem:[%s4172_s18 + $0x28] sm:$0xff] }
 0x521   : >> { %2878 = vst [vmem:[%s4168_s23 + $0x8] sm:$0xff] %v2877_v1  ;;  %2880 = vst [vmem:[%s4168_s23 + $0x18] sm:$0xff] %v2879_v24  ;;  %v2883_v27 = vld [vmem:[%s4172_s18 + $0x38] sm:$0xff]  ;;  %v2885_v28 = vld [vmem:[%s4172_s18 + $0x48] sm:$0xff] }
 0x522   : >> { %2882 = vst [vmem:[%s4168_s23 + $0x28] sm:$0xff] %v2881_v23  ;;  %2884 = vst [vmem:[%s4168_s23 + $0x38] sm:$0xff] %v2883_v27  ;;  %v2887_v29 = vld [vmem:[%s4172_s18 + $0x58] sm:$0xff]  ;;  %v2889_v30 = vld [vmem:[%s4172_s18 + $0x68] sm:$0xff]  ;;  %2841 = sbr.rel (!%p2838_p12) target bundleno = 1304 (0x518), region = 206 }
 0x523   : >> { %2886 = vst [vmem:[%s4168_s23 + $0x48] sm:$0xff] %v2885_v28  ;;  %v2891_v62 = vld [vmem:[%s4172_s18 + $0x78] sm:$0xff]  ;;  %2888 = vst [vmem:[%s4168_s23 + $0x58] sm:$0xff] %v2887_v29  ;;  %v2893_v33 = vld [vmem:[%s4172_s18 + $0x88] sm:$0xff] }
 0x524   : >> { %2890 = vst [vmem:[%s4168_s23 + $0x68] sm:$0xff] %v2889_v30  ;;  %2892 = vst [vmem:[%s4168_s23 + $0x78] sm:$0xff] %v2891_v62  ;;  %v2895_v34 = vld [vmem:[%s4172_s18 + $0x98] sm:$0xff]  ;;  %v2897_v0 = vld [vmem:[%s4172_s18 + $0xa8] sm:$0xff] }
 0x525   : >> { %2894 = vst [vmem:[%s4168_s23 + $0x88] sm:$0xff] %v2893_v33  ;;  %2896 = vst [vmem:[%s4168_s23 + $0x98] sm:$0xff] %v2895_v34  ;;  %v2899_v35 = vld [vmem:[%s4172_s18 + $0xb8] sm:$0xff]  ;;  %v2901_v36 = vld [vmem:[%s4172_s18 + $0xc8] sm:$0xff] }
 0x526   : >> { %2898 = vst [vmem:[%s4168_s23 + $0xa8] sm:$0xff] %v2897_v0  ;;  %v2903_v37 = vld [vmem:[%s4172_s18 + $0xd8] sm:$0xff]  ;;  %2900 = vst [vmem:[%s4168_s23 + $0xb8] sm:$0xff] %v2899_v35  ;;  %v2905_v38 = vld [vmem:[%s4172_s18 + $0xe8] sm:$0xff] }
 0x527   : >> { %2902 = vst [vmem:[%s4168_s23 + $0xc8] sm:$0xff] %v2901_v36  ;;  %2904 = vst [vmem:[%s4168_s23 + $0xd8] sm:$0xff] %v2903_v37  ;;  %v2907_v39 = vld [vmem:[%s4172_s18 + $0xf8] sm:$0xff]  ;;  %s5472_s18 = smov %s5287_s15 }
 0x528   : >> { %2906 = vst [vmem:[%s4168_s23 + $0xe8] sm:$0xff] %v2905_v38  ;;  %2908 = vst [vmem:[%s4168_s23 + $0xf8] sm:$0xff] %v2907_v39  ;;  %s5471_s23 = smov %s2915_s28  ;;  %s5473_s28 = smov %s5483_s20 }
 0x529 PF: > { %s5328_s26 = sand.u32 15, %s5481_s24   ;;  %s3505_s0 = sshll.u32 %s5220_s25, 8 }
 0x52a   : > { %s5332_s1 = scalar_lea.vmem %s5161_s29, %s3505_s0 [#allocation2]   ;;  %s2922_s2 = scalar_lea.vmem %s5214_s27, %s3505_s0  }
 0x52b   : > { %p3482_p13 = scmp.le.s32.totalorder %s5328_s26, 0 }
 0x52c   : > { %s4182_s15 = smov (!%p3482_p13), %s2922_s2   ;;  %s4186_s20 = smov (!%p3482_p13), %s5332_s1  }
 0x52d   : > { %3214 = sbr.rel (%p3482_p13) target bundleno = 1342 (0x53e), region = 211  ;;  %s4190_s3 = smov (!%p3482_p13), 0  }
 0x52e   : > { %s4194_s30 = smov (!%p3482_p13), 0  }
 0x534 LB: >> { %v2932_v40 = vld [vmem:[%s4188_s20] sm:$0xff]  ;;  %v2934_v41 = vld [vmem:[%s4188_s20 + $0x8] sm:$0xff]  ;;  %s2936_s29 = sadd.s32 1, %s4192_s3  ;;  %s2926_s30 = sadd.s32 1, %s4196_s30   ;;  %s4196_s30 = sphi %s4194_s30, %s2926_s30   ;;  %s4192_s3 = sphi %s4190_s3, %s4191_s3   ;;  %s4188_s20 = sphi %s4186_s20, %s2941_s20   ;;  %s4184_s15 = sphi %s4182_s15, %s2942_s15  }
 0x535   : >> { %2933 = vst [vmem:[%s4184_s15] sm:$0xff] %v2932_v40  ;;  %2935 = vst [vmem:[%s4184_s15 + $0x8] sm:$0xff] %v2934_v41  ;;  %p2937_p0 = scmp.ge.s32.totalorder %s2936_s29, %s5328_s26  ;;  %p2925_p1 = scmp.ge.s32.totalorder %s2926_s30, %s5328_s26 }
 0x537   : >> { %s5485_s29 = smov (%p2937_p0, %s2936_s29), 0  ;;  %2928 = sbr.rel (!%p2925_p1) target bundleno = 1332 (0x534), region = 217 }
 0x538   : >> { %s3483_s0 = sshll.u32 %s5485_s29, 4  ;;  %s4191_s3 = smov %s5485_s29  }
 0x539   : >> { %s2941_s20 = scalar_lea.vmem %s5332_s1, %s3483_s0 [#allocation2]   ;;  %s2942_s15 = scalar_lea.vmem %s2922_s2, %s3483_s0  }
 0x53e PF: > { %2948 = sbr.rel (!%p4330_p4) target bundleno = 1398 (0x576), region = 106  ;;  %s2950_s3 = ssub.s32 (%p4330_p4), 63, %s4350_s22 }
 0x53f   : > { %s3507_s24 = sshll.u32 (%p4330_p4), %s4318_s16, 7  ;;  %p2951_p2 = scmp.lt.s32.totalorder (%p4330_p4), %s2950_s3, 16 }
 0x540   : > { %s5347_s23 = scalar_lea.vmem (%p4330_p4), %s5454_s14, %s3507_s24  }
 0x545   : > { %s5487_s3 = smov (!%p2951_p2, %s2950_s3), 16 }
 0x546   : > { %s3486_s18 = sshll.u32 %s5487_s3, 7 }
 0x547   : > { %p3489_p3 = scmp.eq.s32.totalorder %s3486_s18, 0 }
 0x548   : > { %s5353_s1 = sshrl.u32 (!%p3489_p3), %s5487_s3, 4 }
 0x549   : > { %2959 = sbr.rel (%p3489_p3) target bundleno = 1398 (0x576), region = 110  ;;  %p3490_p4 = scmp.le.s32.totalorder (!%p3489_p3), %s5353_s1, 0 }
 0x550   : > { %3228 = sbr.rel (%p3490_p4) target bundleno = 1377 (0x561), region = 222  ;;  %s5474_s2 = smov (!%p3490_p4), %s5347_s23 }
 0x551   : > { %s5475_s16 = smov (!%p3490_p4), %s5000_s19  ;;  %s5362_s21 = smov (!%p3490_p4), 0  }
 0x552   : > { %s5364_s22 = smov (!%p3490_p4), 0  }
 0x557 LB: >> { %v3051_v42 = vld [vmem:[%s4204_s16] sm:$0xff]  ;;  %v3053_v43 = vld [vmem:[%s4204_s16 + $0x8] sm:$0xff]  ;;  %v3055_v44 = vld [vmem:[%s4204_s16 + $0x10] sm:$0xff]  ;;  %s3083_s28 = sadd.s32 1, %s4208_s21  ;;  %s3045_s22 = sadd.s32 1, %s4212_s22   ;;  %s4212_s22 = sphi %s5364_s22, %s3045_s22   ;;  %s4208_s21 = sphi %s5362_s21, %s5476_s21   ;;  %s4204_s16 = sphi %s5475_s16, %s3088_s16   ;;  %s4200_s2 = sphi %s5474_s2, %s3089_s2  }
 0x558   : >> { %3052 = vst [vmem:[%s4200_s2] sm:$0xff] %v3051_v42  ;;  %3054 = vst [vmem:[%s4200_s2 + $0x8] sm:$0xff] %v3053_v43  ;;  %v3057_v45 = vld [vmem:[%s4204_s16 + $0x18] sm:$0xff]  ;;  %v3059_v46 = vld [vmem:[%s4204_s16 + $0x20] sm:$0xff]  ;;  %p3084_p5 = scmp.ge.s32.totalorder %s3083_s28, %s5353_s1  ;;  %p3044_p6 = scmp.ge.s32.totalorder %s3045_s22, %s5353_s1 }
 0x559   : >> { %3056 = vst [vmem:[%s4200_s2 + $0x10] sm:$0xff] %v3055_v44  ;;  %v3061_v47 = vld [vmem:[%s4204_s16 + $0x28] sm:$0xff]  ;;  %3058 = vst [vmem:[%s4200_s2 + $0x18] sm:$0xff] %v3057_v45  ;;  %v3063_v48 = vld [vmem:[%s4204_s16 + $0x30] sm:$0xff] }
 0x55a   : >> { %3060 = vst [vmem:[%s4200_s2 + $0x20] sm:$0xff] %v3059_v46  ;;  %3062 = vst [vmem:[%s4200_s2 + $0x28] sm:$0xff] %v3061_v47  ;;  %v3065_v49 = vld [vmem:[%s4204_s16 + $0x38] sm:$0xff]  ;;  %v3067_v50 = vld [vmem:[%s4204_s16 + $0x40] sm:$0xff]  ;;  %s5489_s28 = smov (%p3084_p5, %s3083_s28), 0  ;;  %3047 = sbr.rel (!%p3044_p6) target bundleno = 1367 (0x557), region = 228 }
 0x55b   : >> { %3064 = vst [vmem:[%s4200_s2 + $0x30] sm:$0xff] %v3063_v48  ;;  %3066 = vst [vmem:[%s4200_s2 + $0x38] sm:$0xff] %v3065_v49  ;;  %v3069_v51 = vld [vmem:[%s4204_s16 + $0x48] sm:$0xff]  ;;  %v3071_v31 = vld [vmem:[%s4204_s16 + $0x50] sm:$0xff]  ;;  %s3491_s26 = sshll.u32 %s5489_s28, 7  ;;  %s5476_s21 = smov %s5489_s28 }
 0x55c   : >> { %3068 = vst [vmem:[%s4200_s2 + $0x40] sm:$0xff] %v3067_v50  ;;  %v3073_v32 = vld [vmem:[%s4204_s16 + $0x58] sm:$0xff]  ;;  %3070 = vst [vmem:[%s4200_s2 + $0x48] sm:$0xff] %v3069_v51  ;;  %v3075_v52 = vld [vmem:[%s4204_s16 + $0x60] sm:$0xff] }
 0x55d   : >> { %3072 = vst [vmem:[%s4200_s2 + $0x50] sm:$0xff] %v3071_v31  ;;  %3074 = vst [vmem:[%s4200_s2 + $0x58] sm:$0xff] %v3073_v32  ;;  %v3077_v53 = vld [vmem:[%s4204_s16 + $0x68] sm:$0xff]  ;;  %v3079_v54 = vld [vmem:[%s4204_s16 + $0x70] sm:$0xff] }
 0x55e   : >> { %3076 = vst [vmem:[%s4200_s2 + $0x60] sm:$0xff] %v3075_v52  ;;  %3078 = vst [vmem:[%s4200_s2 + $0x68] sm:$0xff] %v3077_v53  ;;  %v3081_v55 = vld [vmem:[%s4204_s16 + $0x78] sm:$0xff]  ;;  %s3088_s16 = scalar_lea.vmem %s5000_s19, %s3491_s26 [#allocation3]  }
 0x55f   : >> { %3080 = vst [vmem:[%s4200_s2 + $0x70] sm:$0xff] %v3079_v54  ;;  %3082 = vst [vmem:[%s4200_s2 + $0x78] sm:$0xff] %v3081_v55  ;;  %s3089_s2 = scalar_lea.vmem %s5347_s23, %s3491_s26  }
 0x561 PF: > { %s5422_s15 = sand.u32 15, %s5487_s3   ;;  %s3508_s20 = sshll.u32 %s5353_s1, 7 }
 0x562   : > { %s3094_s30 = scalar_lea.vmem %s5000_s19, %s3508_s20 [#allocation3]   ;;  %s3096_s29 = scalar_lea.vmem %s5347_s23, %s3508_s20  }
 0x563   : > { %p3496_p7 = scmp.le.s32.totalorder %s5422_s15, 0 }
 0x564   : > { %s4214_s0 = smov (!%p3496_p7), %s3096_s29   ;;  %s4218_s24 = smov (!%p3496_p7), %s3094_s30  }
 0x565   : > { %3242 = sbr.rel (%p3496_p7) target bundleno = 1398 (0x576), region = 233  ;;  %s4222_s27 = smov (!%p3496_p7), 0  }
 0x566   : > { %s4226_s25 = smov (!%p3496_p7), 0  }
 0x56c LB: >> { %v3106_v56 = vld [vmem:[%s4220_s24] sm:$0xff]  ;;  %s3108_s3 = sadd.s32 1, %s4224_s27  ;;  %s3100_s25 = sadd.s32 1, %s4228_s25   ;;  %s4228_s25 = sphi %s4226_s25, %s3100_s25   ;;  %s4224_s27 = sphi %s4222_s27, %s4223_s27   ;;  %s4220_s24 = sphi %s4218_s24, %s3113_s24   ;;  %s4216_s0 = sphi %s4214_s0, %s3114_s0  }
 0x56d   : >> { %3107 = vst [vmem:[%s4216_s0] sm:$0xff] %v3106_v56  ;;  %p3109_p8 = scmp.ge.s32.totalorder %s3108_s3, %s5422_s15  ;;  %p3099_p9 = scmp.ge.s32.totalorder %s3100_s25, %s5422_s15 }
 0x56f   : >> { %s5491_s3 = smov (%p3109_p8, %s3108_s3), 0  ;;  %3102 = sbr.rel (!%p3099_p9) target bundleno = 1388 (0x56c), region = 239 }
 0x570   : >> { %s3497_s19 = sshll.u32 %s5491_s3, 3  ;;  %s4223_s27 = smov %s5491_s3  }
 0x571   : >> { %s3113_s24 = scalar_lea.vmem %s3094_s30, %s3497_s19 [#allocation3]   ;;  %s3114_s0 = scalar_lea.vmem %s3096_s29, %s3497_s19  }
 0x576 PF: > { %s5477_s29 = sld [smem:[#allocation4_spill]]  ;;  %s5478_s30 = sld [smem:[#allocation5_spill]] }
 0x577   : > { %p22_p10 = scmp.ge.s32.totalorder %s4320_s17, 6   ;;  %s5479_s15 = smov %s4320_s17 }
 0x579   :  { %24 = sbr.rel (!%p22_p10) target bundleno = 7 (0x7), region = 250 }

</bundles_post_ra>
